<compile_context>
chip_gen: v7x
topology: tpu7x:2x2x1
jax: 0.10.0
libtpu: 0.0.40
codegen_flags: <defaults>
</compile_context>

<pallas_src>
import functools
import math

import jax
import jax.numpy as jnp
import numpy as np
from jax import lax
from jax.experimental import pallas as pl
from jax.experimental.pallas import tpu as pltpu


def _attn_block_kernel(x_ref, gamma_ref, beta_ref, gmt_ref,
                       wq_ref, bq_ref, wk_ref, bk_ref, wv_ref, bv_ref,
                       wp_ref, bp_ref, o_ref,
                       a_sc, b_sc, k_sc, v_sc, *, eps, hw, cg, tq):
    qi = pl.program_id(1)

    # ---- per-sample prep: GroupNorm stats + resident K/V (runs at qi == 0) ----
    @pl.when(qi == 0)
    def _prep():
        x = x_ref[0]                                            # (HW, C) f32

        # Channel sums via MXU (ones @ x) instead of cross-sublane XLU reduce.
        ones = jnp.ones((1, hw), jnp.float32)
        ch_sum = jnp.dot(ones, x, preferred_element_type=jnp.float32)       # (1, C)
        ch_sq = jnp.dot(ones, x * x, preferred_element_type=jnp.float32)    # (1, C)

        gmt = gmt_ref[...]                                      # (G, C) one-hot groups
        contract = (((1,), (1,)), ((), ()))                     # contract channel axes
        n = jnp.float32(hw * cg)
        mean_g = lax.dot_general(ch_sum, gmt, contract,
                                 preferred_element_type=jnp.float32) / n    # (1, G)
        ex2_g = lax.dot_general(ch_sq, gmt, contract,
                                preferred_element_type=jnp.float32) / n     # (1, G)
        # NOTE: one-pass variance (E[x^2]-mean^2); fine for unit-scale activations.
        inv_g = lax.rsqrt(ex2_g - mean_g * mean_g + eps)        # rsqrt on G=32 values

        mean_c = jnp.dot(mean_g, gmt, preferred_element_type=jnp.float32)   # (1, C)
        inv_c = jnp.dot(inv_g, gmt, preferred_element_type=jnp.float32)     # (1, C)

        # Fused GroupNorm affine: h = x * a_c + b_c
        a_c = inv_c * gamma_ref[...]
        b_c = beta_ref[...] - mean_c * a_c
        a_sc[...] = a_c
        b_sc[...] = b_c

        # K / V projections for the whole sample, kept resident in bf16 scratch.
        hb = (x * a_c + b_c).astype(jnp.bfloat16)
        k_sc[...] = (jnp.dot(hb, wk_ref[...], preferred_element_type=jnp.float32)
                     + bk_ref[...]).astype(jnp.bfloat16)
        v_sc[...] = (jnp.dot(hb, wv_ref[...], preferred_element_type=jnp.float32)
                     + bv_ref[...]).astype(jnp.bfloat16)

    # ---- per-query-tile attention ----
    start = pl.multiple_of(qi * tq, tq)
    x_t = x_ref[0, pl.ds(start, tq), :]                          # (tq, C) f32
    h_t = (x_t * a_sc[...] + b_sc[...]).astype(jnp.bfloat16)     # fused GN affine

    # q projection -- wq/bq already carry the 1/sqrt(C) attention scale.
    q = (jnp.dot(h_t, wq_ref[...], preferred_element_type=jnp.float32)
         + bq_ref[...]).astype(jnp.bfloat16)                     # (tq, C) bf16

    # scores = q @ k^T via transposed contraction (no materialized transpose).
    s = lax.dot_general(q, k_sc[...], (((1,), (1,)), ((), ())),
                        preferred_element_type=jnp.float32)      # (tq, HW) f32

    # softmax in f32; normalization deferred until after p @ v.
    m = jnp.max(s, axis=-1, keepdims=True)
    p = jnp.exp(s - m)
    l = jnp.sum(p, axis=-1, keepdims=True)                       # (tq, 1)

    a = jnp.dot(p.astype(jnp.bfloat16), v_sc[...],
                preferred_element_type=jnp.float32)              # (tq, C) f32
    a = a * pl.reciprocal(l, approx=True)                        # EUP reciprocal

    h_out = (jnp.dot(a.astype(jnp.bfloat16), wp_ref[...],
                     preferred_element_type=jnp.float32) + bp_ref[...])
    o_ref[0] = x_t + h_out                                       # residual in f32


def attn_block(x_nchw, params, *, num_groups=32, eps=1e-5, tq=None):
    """x_nchw: (B, C, H, W) float32.  Returns (B, C, H, W)."""
    B, C, H, W = x_nchw.shape
    HW = H * W
    assert C % num_groups == 0
    cg = C // num_groups
    scale = float(C) ** (-0.5)

    # Pick a query tile that divides HW (256-512 is a good production choice).
    if tq is None:
        tq = next((t for t in (512, 256, 128, 64, 32, 16, 8) if HW % t == 0), HW)
    tq = min(tq, HW)
    assert HW % tq == 0
    n_q = HW // tq

    # NCHW -> (B, HW, C): channels on the lane axis.
    x = jnp.transpose(x_nchw, (0, 2, 3, 1)).reshape(B, HW, C).astype(jnp.float32)

    gamma = params["gn_weight"].reshape(1, C).astype(jnp.float32)
    beta = params["gn_bias"].reshape(1, C).astype(jnp.float32)
    # (G, C) one-hot group-membership matrix (row g selects channels of group g).
    gmt = jnp.asarray(
        (np.arange(C)[None, :] // cg) == np.arange(num_groups)[:, None],
        dtype=jnp.float32,
    )

    # 1x1 conv weights (C_out, C_in) -> right-multiply layout (C_in, C_out), bf16.
    # Attention scale folded into the q projection (weights and bias).
    wq = (params["wq"].T * scale).astype(jnp.bfloat16)
    wk = params["wk"].T.astype(jnp.bfloat16)
    wv = params["wv"].T.astype(jnp.bfloat16)
    wp = params["wp"].T.astype(jnp.bfloat16)
    bq = (params["bq"].reshape(1, C) * scale).astype(jnp.float32)
    bk = params["bk"].reshape(1, C).astype(jnp.float32)
    bv = params["bv"].reshape(1, C).astype(jnp.float32)
    bp = params["bp"].reshape(1, C).astype(jnp.float32)

    kernel = functools.partial(_attn_block_kernel, eps=eps, hw=HW, cg=cg, tq=tq)

    mat_spec = pl.BlockSpec((C, C), lambda b, qi: (0, 0))
    vec_spec = pl.BlockSpec((1, C), lambda b, qi: (0, 0))

    out = pl.pallas_call(
        kernel,
        out_shape=jax.ShapeDtypeStruct((B, HW, C), jnp.float32),
        grid_spec=pltpu.PrefetchScalarGridSpec(
            num_scalar_prefetch=0,
            grid=(B, n_q),
            in_specs=[
                pl.BlockSpec((1, HW, C), lambda b, qi: (b, 0, 0)),     # x (whole sample)
                vec_spec,                                               # gamma
                vec_spec,                                               # beta
                pl.BlockSpec((num_groups, C), lambda b, qi: (0, 0)),    # group one-hot
                mat_spec, vec_spec,                                     # wq, bq
                mat_spec, vec_spec,                                     # wk, bk
                mat_spec, vec_spec,                                     # wv, bv
                mat_spec, vec_spec,                                     # wp, bp
            ],
            out_specs=pl.BlockSpec((1, tq, C), lambda b, qi: (b, qi, 0)),
            scratch_shapes=[
                pltpu.VMEM((1, C), jnp.float32),       # a_c (GroupNorm scale)
                pltpu.VMEM((1, C), jnp.float32),       # b_c (GroupNorm shift)
                pltpu.VMEM((HW, C), jnp.bfloat16),     # K (resident per sample)
                pltpu.VMEM((HW, C), jnp.bfloat16),     # V (resident per sample)
            ],
        ),
        compiler_params=pltpu.CompilerParams(
            # batch axis parallel (megacore); query-tile axis must stay
            # sequential because K/V scratch is carried across it.
            dimension_semantics=("parallel", "arbitrary"),
            vmem_limit_bytes=64 * 1024 * 1024,
        ),
    )(x, gamma, beta, gmt, wq, bq, wk, bk, wv, bv, wp, bp)

    # (B, HW, C) -> NCHW
    return jnp.transpose(out.reshape(B, H, W, C), (0, 3, 1, 2))


def init_params(key, C):
    """Deterministic init matching AttnBlock.initialize()."""
    ks = jax.random.split(key, 4)
    # xavier_uniform on (C_out, C_in, 1, 1) conv weight: fan_in = fan_out = C
    bound = math.sqrt(6.0 / (C + C))
    wq = jax.random.uniform(ks[0], (C, C), jnp.float32, -bound, bound)
    wk = jax.random.uniform(ks[1], (C, C), jnp.float32, -bound, bound)
    wv = jax.random.uniform(ks[2], (C, C), jnp.float32, -bound, bound)
    wp = jax.random.uniform(ks[3], (C, C), jnp.float32, -bound * 1e-5, bound * 1e-5)
    zeros = jnp.zeros((C,), jnp.float32)
    return {
        "gn_weight": jnp.ones((C,), jnp.float32),
        "gn_bias": zeros,
        "wq": wq, "bq": zeros,
        "wk": wk, "bk": zeros,
        "wv": wv, "bv": zeros,
        "wp": wp, "bp": zeros,
    }


def attn_block_ref(x, params, *, num_groups=32, eps=1e-5):
    """Pure-JAX reference mirroring the PyTorch forward (NCHW)."""
    B, C, H, W = x.shape
    xg = x.reshape(B, num_groups, C // num_groups, H, W)
    mean = jnp.mean(xg, axis=(2, 3, 4), keepdims=True)
    var = jnp.mean((xg - mean) ** 2, axis=(2, 3, 4), keepdims=True)
    h = ((xg - mean) / jnp.sqrt(var + eps)).reshape(B, C, H, W)
    h = h * params["gn_weight"][None, :, None, None] + params["gn_bias"][None, :, None, None]

    def conv1x1(t, w, b):
        return jnp.einsum("bchw,oc->bohw", t, w) + b[None, :, None, None]

    q = conv1x1(h, params["wq"], params["bq"])
    k = conv1x1(h, params["wk"], params["bk"])
    v = conv1x1(h, params["wv"], params["bv"])
    q = jnp.transpose(q, (0, 2, 3, 1)).reshape(B, H * W, C)
    k = k.reshape(B, C, H * W)
    w = jnp.einsum("bqc,bck->bqk", q, k) * (float(C) ** -0.5)
    w = jax.nn.softmax(w, axis=-1)
    v = jnp.transpose(v, (0, 2, 3, 1)).reshape(B, H * W, C)
    hh = jnp.einsum("bqk,bkc->bqc", w, v)
    hh = jnp.transpose(hh.reshape(B, H, W, C), (0, 3, 1, 2))
    hh = conv1x1(hh, params["wp"], params["bp"])
    return x + hh


if __name__ == "__main__":
    # C must be divisible by 32 (GroupNorm groups); C=128 keeps lanes dense.
    B, C, H, W = 2, 128, 16, 16
    key = jax.random.PRNGKey(0)
    kx, kp = jax.random.split(key)
    x = jax.random.normal(kx, (B, C, H, W), jnp.float32)
    params = init_params(kp, C)

    # 1) Faithful module init (proj gain 1e-5): residual + GroupNorm path,
    #    checked tightly against the f32 reference.
    out = jax.block_until_ready(attn_block(x, params, tq=128))
    ref = jax.block_until_ready(attn_block_ref(x, params))
    np.testing.assert_allclose(np.asarray(out), np.asarray(ref), atol=1e-4, rtol=1e-4)

    # 2) Non-degenerate output projection: exercises the bf16-operand attention
    #    path end-to-end (loose tolerance reflects bf16 matmul operands vs f32 ref).
    params_strong = dict(params)
    params_strong["wp"] = params["wp"] * 1e5
    out2 = jax.block_until_ready(attn_block(x, params_strong, tq=128))
    ref2 = jax.block_until_ready(attn_block_ref(x, params_strong))
    np.testing.assert_allclose(np.asarray(out2), np.asarray(ref2), atol=1e-1, rtol=1e-1)

    print("KERNEL_OK")
</pallas_src>

<mosaic_0001>
module attributes {stable_mosaic.version = 11 : i64} {
  func.func @_attn_block_kernel(%arg0: i32, %arg1: i32, %arg2: memref<1x256x128xf32, #tpu.memory_space<vmem>>, %arg3: memref<1x128xf32, #tpu.memory_space<vmem>>, %arg4: memref<1x128xf32, #tpu.memory_space<vmem>>, %arg5: memref<32x128xf32, #tpu.memory_space<vmem>>, %arg6: memref<128x128xbf16, #tpu.memory_space<vmem>>, %arg7: memref<1x128xf32, #tpu.memory_space<vmem>>, %arg8: memref<128x128xbf16, #tpu.memory_space<vmem>>, %arg9: memref<1x128xf32, #tpu.memory_space<vmem>>, %arg10: memref<128x128xbf16, #tpu.memory_space<vmem>>, %arg11: memref<1x128xf32, #tpu.memory_space<vmem>>, %arg12: memref<128x128xbf16, #tpu.memory_space<vmem>>, %arg13: memref<1x128xf32, #tpu.memory_space<vmem>>, %arg14: memref<1x128x128xf32, #tpu.memory_space<vmem>>, %arg15: memref<1x128xf32, #tpu.memory_space<vmem>>, %arg16: memref<1x128xf32, #tpu.memory_space<vmem>>, %arg17: memref<256x128xbf16, #tpu.memory_space<vmem>>, %arg18: memref<256x128xbf16, #tpu.memory_space<vmem>>) attributes {dimension_semantics = [#tpu.dimension_semantics<parallel>, #tpu.dimension_semantics<arbitrary>], iteration_bounds = array<i64: 2, 2>, scalar_prefetch = 0 : i64, scratch_operands = 4 : i64, tpu.core_type = #tpu.core_type<tc>, window_params = [{transform_indices = @transform_0, window_bounds = array<i64: 1, 256, 128>}, {pipeline_mode = #tpu.pipeline_mode<synchronous>, transform_indices = @transform_1, window_bounds = array<i64: 1, 128>}, {pipeline_mode = #tpu.pipeline_mode<synchronous>, transform_indices = @transform_2, window_bounds = array<i64: 1, 128>}, {pipeline_mode = #tpu.pipeline_mode<synchronous>, transform_indices = @transform_3, window_bounds = array<i64: 32, 128>}, {pipeline_mode = #tpu.pipeline_mode<synchronous>, transform_indices = @transform_4, window_bounds = array<i64: 128, 128>}, {pipeline_mode = #tpu.pipeline_mode<synchronous>, transform_indices = @transform_5, window_bounds = array<i64: 1, 128>}, {pipeline_mode = #tpu.pipeline_mode<synchronous>, transform_indices = @transform_6, window_bounds = array<i64: 128, 128>}, {pipeline_mode = #tpu.pipeline_mode<synchronous>, transform_indices = @transform_7, window_bounds = array<i64: 1, 128>}, {pipeline_mode = #tpu.pipeline_mode<synchronous>, transform_indices = @transform_8, window_bounds = array<i64: 128, 128>}, {pipeline_mode = #tpu.pipeline_mode<synchronous>, transform_indices = @transform_9, window_bounds = array<i64: 1, 128>}, {pipeline_mode = #tpu.pipeline_mode<synchronous>, transform_indices = @transform_10, window_bounds = array<i64: 128, 128>}, {pipeline_mode = #tpu.pipeline_mode<synchronous>, transform_indices = @transform_11, window_bounds = array<i64: 1, 128>}, {transform_indices = @transform_12, window_bounds = array<i64: 1, 128, 128>}]} {
    %c0_i32 = arith.constant 0 : i32
    %0 = arith.cmpi eq, %arg1, %c0_i32 : i32
    %1 = arith.extui %0 : i1 to i32
    %c0_i32_0 = arith.constant 0 : i32
    %2 = arith.cmpi ne, %1, %c0_i32_0 : i32
    scf.if %2 {
      %c0_26 = arith.constant 0 : index
      %c0_27 = arith.constant 0 : index
      %c0_28 = arith.constant 0 : index
      %46 = vector.load %arg2[%c0_26, %c0_27, %c0_28] : memref<1x256x128xf32, #tpu.memory_space<vmem>>, vector<1x256x128xf32>
      %47 = vector.shape_cast %46 : vector<1x256x128xf32> to vector<256x128xf32>
      %cst_29 = arith.constant 1.000000e+00 : f32
      %48 = vector.broadcast %cst_29 : f32 to vector<1x256xf32>
      %cst_30 = arith.constant dense<0.000000e+00> : vector<1x128xf32>
      %49 = tpu.matmul %48, %47, %cst_30 {dimension_numbers = #tpu.dot_dimension_numbers<[1], [0], [0], [1], [0, 0, 1, 1], [], []>} : vector<1x256xf32>, vector<256x128xf32>, vector<1x128xf32> -> vector<1x128xf32>
      %50 = arith.mulf %47, %47 : vector<256x128xf32>
      %cst_31 = arith.constant dense<0.000000e+00> : vector<1x128xf32>
      %51 = tpu.matmul %48, %50, %cst_31 {dimension_numbers = #tpu.dot_dimension_numbers<[1], [0], [0], [1], [0, 0, 1, 1], [], []>} : vector<1x256xf32>, vector<256x128xf32>, vector<1x128xf32> -> vector<1x128xf32>
      %c0_32 = arith.constant 0 : index
      %c0_33 = arith.constant 0 : index
      %52 = vector.load %arg5[%c0_32, %c0_33] : memref<32x128xf32, #tpu.memory_space<vmem>>, vector<32x128xf32>
      %cst_34 = arith.constant dense<0.000000e+00> : vector<1x32xf32>
      %53 = tpu.matmul %49, %52, %cst_34 {dimension_numbers = #tpu.dot_dimension_numbers<[1], [1], [0], [0], [0, 0, 1, 0], [], []>} : vector<1x128xf32>, vector<32x128xf32>, vector<1x32xf32> -> vector<1x32xf32>
      %cst_35 = arith.constant 1.024000e+03 : f32
      %54 = vector.broadcast %cst_35 : f32 to vector<1x32xf32>
      %55 = arith.divf %53, %54 : vector<1x32xf32>
      %cst_36 = arith.constant dense<0.000000e+00> : vector<1x32xf32>
      %56 = tpu.matmul %51, %52, %cst_36 {dimension_numbers = #tpu.dot_dimension_numbers<[1], [1], [0], [0], [0, 0, 1, 0], [], []>} : vector<1x128xf32>, vector<32x128xf32>, vector<1x32xf32> -> vector<1x32xf32>
      %cst_37 = arith.constant 1.024000e+03 : f32
      %57 = vector.broadcast %cst_37 : f32 to vector<1x32xf32>
      %58 = arith.divf %56, %57 : vector<1x32xf32>
      %59 = arith.mulf %55, %55 : vector<1x32xf32>
      %60 = arith.subf %58, %59 : vector<1x32xf32>
      %cst_38 = arith.constant 9.99999974E-6 : f32
      %61 = vector.broadcast %cst_38 : f32 to vector<1x32xf32>
      %62 = arith.addf %60, %61 : vector<1x32xf32>
      %63 = math.rsqrt %62 : vector<1x32xf32>
      %cst_39 = arith.constant dense<0.000000e+00> : vector<1x128xf32>
      %64 = tpu.matmul %55, %52, %cst_39 {dimension_numbers = #tpu.dot_dimension_numbers<[1], [0], [0], [1], [0, 0, 1, 1], [], []>} : vector<1x32xf32>, vector<32x128xf32>, vector<1x128xf32> -> vector<1x128xf32>
      %cst_40 = arith.constant dense<0.000000e+00> : vector<1x128xf32>
      %65 = tpu.matmul %63, %52, %cst_40 {dimension_numbers = #tpu.dot_dimension_numbers<[1], [0], [0], [1], [0, 0, 1, 1], [], []>} : vector<1x32xf32>, vector<32x128xf32>, vector<1x128xf32> -> vector<1x128xf32>
      %c0_41 = arith.constant 0 : index
      %c0_42 = arith.constant 0 : index
      %66 = vector.load %arg3[%c0_41, %c0_42] : memref<1x128xf32, #tpu.memory_space<vmem>>, vector<1x128xf32>
      %67 = arith.mulf %65, %66 : vector<1x128xf32>
      %c0_43 = arith.constant 0 : index
      %c0_44 = arith.constant 0 : index
      %68 = vector.load %arg4[%c0_43, %c0_44] : memref<1x128xf32, #tpu.memory_space<vmem>>, vector<1x128xf32>
      %69 = arith.mulf %64, %67 : vector<1x128xf32>
      %70 = arith.subf %68, %69 : vector<1x128xf32>
      %c0_45 = arith.constant 0 : index
      %c0_46 = arith.constant 0 : index
      %71 = vector.load %arg15[%c0_45, %c0_46] : memref<1x128xf32, #tpu.memory_space<vmem>>, vector<1x128xf32>
      tpu.vector_store %arg15[%c0_45, %c0_46], %67 {strides = array<i32>} : memref<1x128xf32, #tpu.memory_space<vmem>>, vector<1x128xf32>,
      %c0_47 = arith.constant 0 : index
      %c0_48 = arith.constant 0 : index
      %72 = vector.load %arg16[%c0_47, %c0_48] : memref<1x128xf32, #tpu.memory_space<vmem>>, vector<1x128xf32>
      tpu.vector_store %arg16[%c0_47, %c0_48], %70 {strides = array<i32>} : memref<1x128xf32, #tpu.memory_space<vmem>>, vector<1x128xf32>,
      %73 = vector.broadcast %67 : vector<1x128xf32> to vector<256x128xf32>
      %74 = arith.mulf %47, %73 : vector<256x128xf32>
      %75 = vector.broadcast %70 : vector<1x128xf32> to vector<256x128xf32>
      %76 = arith.addf %74, %75 : vector<256x128xf32>
      %77 = arith.truncf %76 : vector<256x128xf32> to vector<256x128xbf16>
      %c0_49 = arith.constant 0 : index
      %c0_50 = arith.constant 0 : index
      %78 = vector.load %arg8[%c0_49, %c0_50] : memref<128x128xbf16, #tpu.memory_space<vmem>>, vector<128x128xbf16>
      %cst_51 = arith.constant dense<0.000000e+00> : vector<256x128xf32>
      %79 = tpu.matmul %77, %78, %cst_51 {dimension_numbers = #tpu.dot_dimension_numbers<[1], [0], [0], [1], [0, 0, 1, 1], [], []>} : vector<256x128xbf16>, vector<128x128xbf16>, vector<256x128xf32> -> vector<256x128xf32>
      %c0_52 = arith.constant 0 : index
      %c0_53 = arith.constant 0 : index
      %80 = vector.load %arg9[%c0_52, %c0_53] : memref<1x128xf32, #tpu.memory_space<vmem>>, vector<1x128xf32>
      %81 = vector.broadcast %80 : vector<1x128xf32> to vector<256x128xf32>
      %82 = arith.addf %79, %81 : vector<256x128xf32>
      %83 = arith.truncf %82 : vector<256x128xf32> to vector<256x128xbf16>
      %c0_54 = arith.constant 0 : index
      %c0_55 = arith.constant 0 : index
      %84 = vector.load %arg17[%c0_54, %c0_55] : memref<256x128xbf16, #tpu.memory_space<vmem>>, vector<256x128xbf16>
      tpu.vector_store %arg17[%c0_54, %c0_55], %83 {strides = array<i32>} : memref<256x128xbf16, #tpu.memory_space<vmem>>, vector<256x128xbf16>,
      %c0_56 = arith.constant 0 : index
      %c0_57 = arith.constant 0 : index
      %85 = vector.load %arg10[%c0_56, %c0_57] : memref<128x128xbf16, #tpu.memory_space<vmem>>, vector<128x128xbf16>
      %cst_58 = arith.constant dense<0.000000e+00> : vector<256x128xf32>
      %86 = tpu.matmul %77, %85, %cst_58 {dimension_numbers = #tpu.dot_dimension_numbers<[1], [0], [0], [1], [0, 0, 1, 1], [], []>} : vector<256x128xbf16>, vector<128x128xbf16>, vector<256x128xf32> -> vector<256x128xf32>
      %c0_59 = arith.constant 0 : index
      %c0_60 = arith.constant 0 : index
      %87 = vector.load %arg11[%c0_59, %c0_60] : memref<1x128xf32, #tpu.memory_space<vmem>>, vector<1x128xf32>
      %88 = vector.broadcast %87 : vector<1x128xf32> to vector<256x128xf32>
      %89 = arith.addf %86, %88 : vector<256x128xf32>
      %90 = arith.truncf %89 : vector<256x128xf32> to vector<256x128xbf16>
      %c0_61 = arith.constant 0 : index
      %c0_62 = arith.constant 0 : index
      %91 = vector.load %arg18[%c0_61, %c0_62] : memref<256x128xbf16, #tpu.memory_space<vmem>>, vector<256x128xbf16>
      tpu.vector_store %arg18[%c0_61, %c0_62], %90 {strides = array<i32>} : memref<256x128xbf16, #tpu.memory_space<vmem>>, vector<256x128xbf16>,
    } else {
    }
    %c128_i32 = arith.constant 128 : i32
    %3 = arith.muli %arg1, %c128_i32 : i32
    %4 = tpu.assume_multiple %3, 128 : i32
    %c0 = arith.constant 0 : index
    %5 = arith.index_cast %4 : i32 to index
    %c0_1 = arith.constant 0 : index
    %6 = vector.load %arg2[%c0, %5, %c0_1] : memref<1x256x128xf32, #tpu.memory_space<vmem>>, vector<1x128x128xf32>
    %7 = vector.shape_cast %6 : vector<1x128x128xf32> to vector<128x128xf32>
    %c0_2 = arith.constant 0 : index
    %c0_3 = arith.constant 0 : index
    %8 = vector.load %arg15[%c0_2, %c0_3] : memref<1x128xf32, #tpu.memory_space<vmem>>, vector<1x128xf32>
    %9 = vector.broadcast %8 : vector<1x128xf32> to vector<128x128xf32>
    %10 = arith.mulf %7, %9 : vector<128x128xf32>
    %c0_4 = arith.constant 0 : index
    %c0_5 = arith.constant 0 : index
    %11 = vector.load %arg16[%c0_4, %c0_5] : memref<1x128xf32, #tpu.memory_space<vmem>>, vector<1x128xf32>
    %12 = vector.broadcast %11 : vector<1x128xf32> to vector<128x128xf32>
    %13 = arith.addf %10, %12 : vector<128x128xf32>
    %14 = arith.truncf %13 : vector<128x128xf32> to vector<128x128xbf16>
    %c0_6 = arith.constant 0 : index
    %c0_7 = arith.constant 0 : index
    %15 = vector.load %arg6[%c0_6, %c0_7] : memref<128x128xbf16, #tpu.memory_space<vmem>>, vector<128x128xbf16>
    %cst = arith.constant dense<0.000000e+00> : vector<128x128xf32>
    %16 = tpu.matmul %14, %15, %cst {dimension_numbers = #tpu.dot_dimension_numbers<[1], [0], [0], [1], [0, 0, 1, 1], [], []>} : vector<128x128xbf16>, vector<128x128xbf16>, vector<128x128xf32> -> vector<128x128xf32>
    %c0_8 = arith.constant 0 : index
    %c0_9 = arith.constant 0 : index
    %17 = vector.load %arg7[%c0_8, %c0_9] : memref<1x128xf32, #tpu.memory_space<vmem>>, vector<1x128xf32>
    %18 = vector.broadcast %17 : vector<1x128xf32> to vector<128x128xf32>
    %19 = arith.addf %16, %18 : vector<128x128xf32>
    %20 = arith.truncf %19 : vector<128x128xf32> to vector<128x128xbf16>
    %c0_10 = arith.constant 0 : index
    %c0_11 = arith.constant 0 : index
    %21 = vector.load %arg17[%c0_10, %c0_11] : memref<256x128xbf16, #tpu.memory_space<vmem>>, vector<256x128xbf16>
    %cst_12 = arith.constant dense<0.000000e+00> : vector<128x256xf32>
    %22 = tpu.matmul %20, %21, %cst_12 {dimension_numbers = #tpu.dot_dimension_numbers<[1], [1], [0], [0], [0, 0, 1, 0], [], []>} : vector<128x128xbf16>, vector<256x128xbf16>, vector<128x256xf32> -> vector<128x256xf32>
    %cst_13 = arith.constant dense<0xFF800000> : vector<128xf32>
    %23 = vector.multi_reduction <maximumf>, %22, %cst_13 [1] : vector<128x256xf32> to vector<128xf32>
    %24 = vector.shape_cast %23 : vector<128xf32> to vector<128x1xf32>
    %25 = vector.broadcast %24 : vector<128x1xf32> to vector<128x256xf32>
    %26 = arith.subf %22, %25 : vector<128x256xf32>
    %27 = math.exp %26 : vector<128x256xf32>
    %cst_14 = arith.constant dense<0.000000e+00> : vector<128xf32>
    %28 = vector.multi_reduction <add>, %27, %cst_14 [1] : vector<128x256xf32> to vector<128xf32>
    %29 = vector.shape_cast %28 : vector<128xf32> to vector<128x1xf32>
    %30 = arith.truncf %27 : vector<128x256xf32> to vector<128x256xbf16>
    %c0_15 = arith.constant 0 : index
    %c0_16 = arith.constant 0 : index
    %31 = vector.load %arg18[%c0_15, %c0_16] : memref<256x128xbf16, #tpu.memory_space<vmem>>, vector<256x128xbf16>
    %cst_17 = arith.constant dense<0.000000e+00> : vector<128x128xf32>
    %32 = tpu.matmul %30, %31, %cst_17 {dimension_numbers = #tpu.dot_dimension_numbers<[1], [0], [0], [1], [0, 0, 1, 1], [], []>} : vector<128x256xbf16>, vector<256x128xbf16>, vector<128x128xf32> -> vector<128x128xf32>
    %33 = tpu.reciprocal %29 {approx = true} : vector<128x1xf32> -> vector<128x1xf32>
    %34 = vector.broadcast %33 : vector<128x1xf32> to vector<128x128xf32>
    %35 = arith.mulf %32, %34 : vector<128x128xf32>
    %36 = arith.truncf %35 : vector<128x128xf32> to vector<128x128xbf16>
    %c0_18 = arith.constant 0 : index
    %c0_19 = arith.constant 0 : index
    %37 = vector.load %arg12[%c0_18, %c0_19] : memref<128x128xbf16, #tpu.memory_space<vmem>>, vector<128x128xbf16>
    %cst_20 = arith.constant dense<0.000000e+00> : vector<128x128xf32>
    %38 = tpu.matmul %36, %37, %cst_20 {dimension_numbers = #tpu.dot_dimension_numbers<[1], [0], [0], [1], [0, 0, 1, 1], [], []>} : vector<128x128xbf16>, vector<128x128xbf16>, vector<128x128xf32> -> vector<128x128xf32>
    %c0_21 = arith.constant 0 : index
    %c0_22 = arith.constant 0 : index
    %39 = vector.load %arg13[%c0_21, %c0_22] : memref<1x128xf32, #tpu.memory_space<vmem>>, vector<1x128xf32>
    %40 = vector.broadcast %39 : vector<1x128xf32> to vector<128x128xf32>
    %41 = arith.addf %38, %40 : vector<128x128xf32>
    %42 = arith.addf %7, %41 : vector<128x128xf32>
    %c0_23 = arith.constant 0 : index
    %c0_24 = arith.constant 0 : index
    %c0_25 = arith.constant 0 : index
    %43 = vector.load %arg14[%c0_23, %c0_24, %c0_25] : memref<1x128x128xf32, #tpu.memory_space<vmem>>, vector<1x128x128xf32>
    %44 = vector.shape_cast %43 : vector<1x128x128xf32> to vector<128x128xf32>
    %45 = vector.shape_cast %42 : vector<128x128xf32> to vector<1x128x128xf32>
    tpu.vector_store %arg14[%c0_23, %c0_24, %c0_25], %45 {strides = array<i32>} : memref<1x128x128xf32, #tpu.memory_space<vmem>>, vector<1x128x128xf32>,
    return
  }
  func.func @transform_0(%arg0: i32, %arg1: i32) -> (i32, i32, i32) {
    %c0_i32 = arith.constant 0 : i32
    %c0_i32_0 = arith.constant 0 : i32
    %c0_i32_1 = arith.constant 0 : i32
    return %arg0, %c0_i32, %c0_i32_0 : i32, i32, i32
  }
  func.func @transform_1(%arg0: i32, %arg1: i32) -> (i32, i32) {
    %c0_i32 = arith.constant 0 : i32
    %c0_i32_0 = arith.constant 0 : i32
    %c0_i32_1 = arith.constant 0 : i32
    return %c0_i32, %c0_i32_0 : i32, i32
  }
  func.func @transform_2(%arg0: i32, %arg1: i32) -> (i32, i32) {
    %c0_i32 = arith.constant 0 : i32
    %c0_i32_0 = arith.constant 0 : i32
    %c0_i32_1 = arith.constant 0 : i32
    return %c0_i32, %c0_i32_0 : i32, i32
  }
  func.func @transform_3(%arg0: i32, %arg1: i32) -> (i32, i32) {
    %c0_i32 = arith.constant 0 : i32
    %c0_i32_0 = arith.constant 0 : i32
    %c0_i32_1 = arith.constant 0 : i32
    return %c0_i32, %c0_i32_0 : i32, i32
  }
  func.func @transform_4(%arg0: i32, %arg1: i32) -> (i32, i32) {
    %c0_i32 = arith.constant 0 : i32
    %c0_i32_0 = arith.constant 0 : i32
    %c0_i32_1 = arith.constant 0 : i32
    return %c0_i32, %c0_i32_0 : i32, i32
  }
  func.func @transform_5(%arg0: i32, %arg1: i32) -> (i32, i32) {
    %c0_i32 = arith.constant 0 : i32
    %c0_i32_0 = arith.constant 0 : i32
    %c0_i32_1 = arith.constant 0 : i32
    return %c0_i32, %c0_i32_0 : i32, i32
  }
  func.func @transform_6(%arg0: i32, %arg1: i32) -> (i32, i32) {
    %c0_i32 = arith.constant 0 : i32
    %c0_i32_0 = arith.constant 0 : i32
    %c0_i32_1 = arith.constant 0 : i32
    return %c0_i32, %c0_i32_0 : i32, i32
  }
  func.func @transform_7(%arg0: i32, %arg1: i32) -> (i32, i32) {
    %c0_i32 = arith.constant 0 : i32
    %c0_i32_0 = arith.constant 0 : i32
    %c0_i32_1 = arith.constant 0 : i32
    return %c0_i32, %c0_i32_0 : i32, i32
  }
  func.func @transform_8(%arg0: i32, %arg1: i32) -> (i32, i32) {
    %c0_i32 = arith.constant 0 : i32
    %c0_i32_0 = arith.constant 0 : i32
    %c0_i32_1 = arith.constant 0 : i32
    return %c0_i32, %c0_i32_0 : i32, i32
  }
  func.func @transform_9(%arg0: i32, %arg1: i32) -> (i32, i32) {
    %c0_i32 = arith.constant 0 : i32
    %c0_i32_0 = arith.constant 0 : i32
    %c0_i32_1 = arith.constant 0 : i32
    return %c0_i32, %c0_i32_0 : i32, i32
  }
  func.func @transform_10(%arg0: i32, %arg1: i32) -> (i32, i32) {
    %c0_i32 = arith.constant 0 : i32
    %c0_i32_0 = arith.constant 0 : i32
    %c0_i32_1 = arith.constant 0 : i32
    return %c0_i32, %c0_i32_0 : i32, i32
  }
  func.func @transform_11(%arg0: i32, %arg1: i32) -> (i32, i32) {
    %c0_i32 = arith.constant 0 : i32
    %c0_i32_0 = arith.constant 0 : i32
    %c0_i32_1 = arith.constant 0 : i32
    return %c0_i32, %c0_i32_0 : i32, i32
  }
  func.func @transform_12(%arg0: i32, %arg1: i32) -> (i32, i32, i32) {
    %c0_i32 = arith.constant 0 : i32
    %c0_i32_0 = arith.constant 0 : i32
    return %arg0, %arg1, %c0_i32 : i32, i32, i32
  }
}

</mosaic_0001>

<bundles_post_ra>
// kernel: tpu_custom_call.1
= control target key start
LH: loop header
LB: loop body
LE: loop exit
PB: predicated region body
PF: predicated region fallthrough
CT: control target
= control target key end

     0   :  { %s5588_s0 = inlined_call_operand.hbm [shape: f32[2,256,128], index: 0, kind: input, shape index: {}]   ;;  %s5589_s1 = inlined_call_operand.hbm [shape: f32[1,128], index: 1, kind: input, shape index: {}]   ;;  %s5590_s2 = inlined_call_operand.hbm [shape: f32[1,128], index: 2, kind: input, shape index: {}]   ;;  %s5591_s3 = inlined_call_operand.hbm [shape: f32[32,128], index: 3, kind: input, shape index: {}]   ;;  %s5592_s4 = inlined_call_operand.hbm [shape: bf16[128,128], index: 4, kind: input, shape index: {}]   ;;  %s5593_s5 = inlined_call_operand.hbm [shape: f32[1,128], index: 5, kind: input, shape index: {}]   ;;  %s5594_s6 = inlined_call_operand.hbm [shape: bf16[128,128], index: 6, kind: input, shape index: {}]   ;;  %s5595_s7 = inlined_call_operand.hbm [shape: f32[1,128], index: 7, kind: input, shape index: {}]   ;;  %s5596_s8 = inlined_call_operand.hbm [shape: bf16[128,128], index: 8, kind: input, shape index: {}]   ;;  %s5597_s9 = inlined_call_operand.hbm [shape: f32[1,128], index: 9, kind: input, shape index: {}]   ;;  %s5598_s10 = inlined_call_operand.hbm [shape: bf16[128,128], index: 10, kind: input, shape index: {}]   ;;  %s5599_s11 = inlined_call_operand.hbm [shape: f32[1,128], index: 11, kind: input, shape index: {}]   ;;  %s5600_s12 = inlined_call_operand.hbm [shape: f32[2,256,128], index: 12, kind: output, shape index: {}]  }
   0x1   :  { %5617 = sst [smem:[#allocation42_spill]] %s5588_s0 }
   0x2   :  { %5618 = sst [smem:[#allocation43_spill]] %s5589_s1 }
   0x3   :  { %5619 = sst [smem:[#allocation44_spill]] %s5590_s2 }
   0x4   :  { %5620 = sst [smem:[#allocation45_spill]] %s5591_s3 }
   0x5   :  { %5621 = sst [smem:[#allocation46_spill]] %s5592_s4 }
   0x6   :  { %5622 = sst [smem:[#allocation47_spill]] %s5593_s5 }
   0x7   :  { %5623 = sst [smem:[#allocation48_spill]] %s5594_s6 }
   0x8   :  { %5624 = sst [smem:[#allocation49_spill]] %s5600_s12 }
   0x9   :  { %17 = vsyncpa [#allocation7], 0 }
   0xa   :  { %19 = vsyncpa [#allocation7 + $0x1], 0 }
   0xb   :  { %20 = vsyncpa [#allocation10], 0 }
   0xc   :  { %21 = vsyncpa [#allocation13], 0 }
   0xd   :  { %22 = vsyncpa [#allocation16], 0 }
   0xe   :  { %23 = vsyncpa [#allocation19], 0 }
   0xf   :  { %24 = vsyncpa [#allocation22], 0 }
  0x10   :  { %25 = vsyncpa [#allocation25], 0 }
  0x11   :  { %26 = vsyncpa [#allocation8], 0 }
  0x12   :  { %28 = vsyncpa [#allocation8 + $0x1], 0  ;;  %s4473_s21 = smov 0   ;;  %s4475_s22 = smov 0  }
  0x13   :  { %s4477_s23 = smov 0   ;;  %s4479_s24 = smov 0  }
  0x14   :  { %s4481_s25 = smov 0   ;;  %s4483_s26 = smov 0  }
  0x15   :  { %s4485_s27 = smov 0   ;;  %s4487_s28 = smov 0  }
  0x16   :  { %s4489_s29 = smov 0   ;;  %s4491_s30 = smov 0  }
  0x17   :  { %s4493_s13 = smov 0  }
  0x18 LB: > { %5625 = sst [smem:[#allocation35_spill]] %s4343_s21  ;;  %s5601_s14 = sadd.s32 4294967295, %s4383_s13   ;;  %s4383_s13 = sphi %s4493_s13, %s34_s13   ;;  %s4379_s30 = sphi %s4491_s30, %s5681_s30   ;;  %s4375_s29 = sphi %s4489_s29, %s5680_s29   ;;  %s4371_s28 = sphi %s4487_s28, %s5679_s28   ;;  %s4367_s27 = sphi %s4485_s27, %s5678_s27   ;;  %s4363_s26 = sphi %s4483_s26, %s5677_s26   ;;  %s4359_s25 = sphi %s4481_s25, %s5676_s25   ;;  %s4355_s24 = sphi %s4479_s24, %s5675_s24   ;;  %s4351_s23 = sphi %s4477_s23, %s5674_s23   ;;  %s4347_s22 = sphi %s4475_s22, %s5673_s22   ;;  %s4343_s21 = sphi %s4473_s21, %s5669_s21  }
  0x19   : > { %5626 = sst [smem:[#allocation36_spill]] %s4347_s22  ;;  %p2877_p0 = scmp.ge.s32.totalorder %s4383_s13, 1 }
  0x1a   : > { %5627 = sst [smem:[#allocation37_spill]] %s4351_s23  ;;  %p4532_p1 = scmp.eq.s32.totalorder %s5601_s14, 0 }
  0x1b   : > { %5628 = sst [smem:[#allocation38_spill]] %s4367_s27  ;;  %p336_p2 = scmp.lt.s32.totalorder %s4383_s13, 5 }
  0x1c   : > { %5629 = sst [smem:[#allocation39_spill]] %s4371_s28  ;;  %s4385_s17 = smov [#allocation9]  }
  0x1d   : > { %s5630_s15 = scalar_select %p4532_p1, 1, 0 }
  0x1e   : > { %p4537_p3 = pnand %p2877_p0, %p336_p2  ;;  %s349_s18 = sshll.u32 %s4385_s17, 4  ;;  %s350_s18 = int_to_ptr.vmem [resolvable:$true] %s349_s18 }
  0x1f   : > { %5631 = sst [smem:[#allocation40_spill]] %s5630_s15  ;;  %s4386_s19 = smov [#allocation12]  }
  0x20   : > { %s5632_s16 = scalar_select %p4537_p3, 1, 0 }
  0x21   : > { %p3578_p4 = pneg %p4537_p3  ;;  %s370_s20 = sshll.u32 %s4386_s19, 4  ;;  %s4549_s20 = int_to_ptr.vmem [resolvable:$true] %s370_s20 }
  0x22   : > { %5633 = sst [smem:[#allocation41_spill]] %s5632_s16  ;;  %s4387_s12 = smov [#allocation15]  }
  0x23   : > { %p4545_p5 = pnand %p3578_p4, %p4532_p1  ;;  %s4551_s28 = sshll.u32 %s4387_s12, 4  ;;  %s398_s28 = int_to_ptr.vmem [resolvable:$true] %s4551_s28 }
  0x24   : > { %s5635_s1 = sld [smem:[#allocation43_spill]] }
  0x25   : > { %p4561_p7 = pneg %p4545_p5 }
  0x2a   : > { %s3899_s17 = scalar_lea.hbm %s5635_s1, 16 }
  0x2b   : > { %p3900_p6 = scmp.ne.s32.totalorder %s5635_s1, %s3899_s17  ;;  %p3906_p10 = scmp.lt.u32.totalorder %s3899_s17, %s5635_s1 }
  0x2d   : > { %p3902_p8 = pnand %p4561_p7, %p3900_p6 }
  0x2f   : > { %p3903_p9 = pneg %p3902_p8 }
  0x31   : > { %p3908_p11 = pnand %p3906_p10, %p3903_p9 }
  0x33   : > { %3911 = shalt.err (!%p3908_p11)
}
  0x34   : > { %s3912_s0 = scalar_lea.vmem %s350_s18, 16  ;;  %s3919_s21 = scalar_lea.vmem %s350_s18, 32 }
  0x35   : > { %p3913_p12 = scmp.ne.s32.totalorder %s350_s18, %s3912_s0  ;;  %p3920_p2 = scmp.lt.s32.totalorder %s350_s18, %s350_s18 }
  0x36   : > { %p3921_p4 = scmp.lt.s32.totalorder %s3919_s21, %s3912_s0 }
  0x37   : > { %p3915_p13 = pnand %p3913_p12, %p4561_p7 }
  0x38   : > { %p3922_p3 = por %p3921_p4, %p3920_p2 }
  0x39   : > { %p3916_p0 = pneg %p3915_p13 }
  0x3b   : > { %p3923_p1 = pnand %p3922_p3, %p3916_p0 }
  0x3d   : > { %3926 = shalt.err (!%p3923_p1)
}
  0x3e   : > { %3581 = dma.hbm_to_vmem [thread:$0]  (!%p4545_p5), %s5635_s1, 16, %s350_s18, [#allocation10]  }
  0x3f   : > { %s5637_s3 = sld [smem:[#allocation45_spill]] }
  0x45   : > { %s3927_s12 = scalar_lea.hbm %s5637_s3, 512 }
  0x46   : > { %p3928_p6 = scmp.ne.s32.totalorder %s5637_s3, %s3927_s12  ;;  %p3934_p1 = scmp.lt.u32.totalorder %s3927_s12, %s5637_s3 }
  0x48   : > { %p3930_p8 = pnand %p3928_p6, %p4561_p7 }
  0x4a   : > { %p3931_p9 = pneg %p3930_p8 }
  0x4c   : > { %p3936_p3 = pnand %p3934_p1, %p3931_p9 }
  0x4e   : > { %3939 = shalt.err (!%p3936_p3)
}
  0x4f   : > { %s3940_s18 = scalar_lea.vmem %s4549_s20, 512  ;;  %p3948_p13 = scmp.lt.s32.totalorder %s4549_s20, %s4549_s20 }
  0x50   : > { %p3941_p10 = scmp.ne.s32.totalorder %s4549_s20, %s3940_s18  ;;  %p3949_p0 = scmp.lt.s32.totalorder %s3940_s18, %s3940_s18 }
  0x52   : > { %p3943_p11 = pnand %p3941_p10, %p4561_p7  ;;  %p3950_p2 = por %p3949_p0, %p3948_p13 }
  0x54   : > { %p3944_p12 = pneg %p3943_p11 }
  0x56   : > { %p3951_p4 = pnand %p3950_p2, %p3944_p12 }
  0x58   : > { %3954 = shalt.err (!%p3951_p4)
}
  0x59   : > { %s5614_s23 = smov 128   ;;  %s5615_s15 = smov 8  }
  0x5a   : > { %3587 = dma.hbm_to_vmem [thread:$0]  (!%p4545_p5), %s5637_s3, 512, %s4549_s20, [#allocation13], %s5614_s23, %s5614_s23, %s5615_s15  }
  0x5b   : > { %s5638_s5 = sld [smem:[#allocation47_spill]] }
  0x61   : > { %s3955_s12 = scalar_lea.hbm %s5638_s5, 16 }
  0x62   : > { %p3956_p6 = scmp.ne.s32.totalorder %s5638_s5, %s3955_s12  ;;  %p3962_p1 = scmp.lt.u32.totalorder %s3955_s12, %s5638_s5 }
  0x64   : > { %p3958_p8 = pnand %p3956_p6, %p4561_p7 }
  0x66   : > { %p3959_p9 = pneg %p3958_p8 }
  0x68   : > { %p3964_p3 = pnand %p3962_p1, %p3959_p9 }
  0x6a   : > { %3967 = shalt.err (!%p3964_p3)
}
  0x6b   : > { %s3968_s27 = scalar_lea.vmem %s398_s28, 16  ;;  %s3975_s20 = scalar_lea.vmem %s398_s28, 32 }
  0x6c   : > { %p3969_p10 = scmp.ne.s32.totalorder %s398_s28, %s3968_s27  ;;  %p3976_p13 = scmp.lt.s32.totalorder %s398_s28, %s398_s28 }
  0x6d   : > { %p3977_p0 = scmp.lt.s32.totalorder %s3975_s20, %s3968_s27 }
  0x6e   : > { %p3971_p11 = pnand %p3969_p10, %p4561_p7 }
  0x6f   : > { %p3978_p2 = por %p3977_p0, %p3976_p13 }
  0x70   : > { %p3972_p12 = pneg %p3971_p11 }
  0x72   : > { %p3979_p4 = pnand %p3978_p2, %p3972_p12 }
  0x74   : > { %3982 = shalt.err (!%p3979_p4)
}
  0x75   : > { %3593 = dma.hbm_to_vmem [thread:$0]  (!%p4545_p5), %s5638_s5, 16, %s398_s28, [#allocation16]  }
  0x76   : > { %s4390_s1 = smov [#allocation18]   ;;  %s4391_s12 = smov [#allocation21]  }
  0x77   : > { %s421_s17 = sshll.u32 %s4390_s1, 4  ;;  %s445_s0 = sshll.u32 %s4391_s12, 4  ;;  %s422_s17 = int_to_ptr.vmem [resolvable:$true] %s421_s17  ;;  %s446_s0 = int_to_ptr.vmem [resolvable:$true] %s445_s0 }
  0x78   : > { %s3983_s23 = scalar_lea.hbm %s5595_s7, 16 }
  0x79   : > { %p3984_p6 = scmp.ne.s32.totalorder %s5595_s7, %s3983_s23  ;;  %p3990_p1 = scmp.lt.u32.totalorder %s3983_s23, %s5595_s7 }
  0x7b   : > { %p3986_p8 = pnand %p3984_p6, %p4561_p7 }
  0x7d   : > { %p3987_p9 = pneg %p3986_p8 }
  0x7f   : > { %p3992_p3 = pnand %p3990_p1, %p3987_p9 }
  0x81   : > { %3995 = shalt.err (!%p3992_p3)
}
  0x82   : > { %s3996_s28 = scalar_lea.vmem %s422_s17, 16  ;;  %s4003_s22 = scalar_lea.vmem %s422_s17, 32 }
  0x83   : > { %p3997_p10 = scmp.ne.s32.totalorder %s422_s17, %s3996_s28  ;;  %p4004_p13 = scmp.lt.s32.totalorder %s422_s17, %s422_s17 }
  0x84   : > { %p4005_p0 = scmp.lt.s32.totalorder %s4003_s22, %s3996_s28 }
  0x85   : > { %p3999_p11 = pnand %p3997_p10, %p4561_p7 }
  0x86   : > { %p4006_p2 = por %p4005_p0, %p4004_p13 }
  0x87   : > { %p4000_p12 = pneg %p3999_p11 }
  0x89   : > { %p4007_p4 = pnand %p4006_p2, %p4000_p12 }
  0x8b   : > { %4010 = shalt.err (!%p4007_p4)
}
  0x8c   : > { %3599 = dma.hbm_to_vmem [thread:$0]  (!%p4545_p5), %s5595_s7, 16, %s422_s17, [#allocation19]  }
  0x8d   : > { %s4011_s21 = scalar_lea.hbm %s5597_s9, 16 }
  0x8e   : > { %p4012_p6 = scmp.ne.s32.totalorder %s5597_s9, %s4011_s21  ;;  %p4018_p1 = scmp.lt.u32.totalorder %s4011_s21, %s5597_s9 }
  0x90   : > { %p4014_p8 = pnand %p4012_p6, %p4561_p7 }
  0x92   : > { %p4015_p9 = pneg %p4014_p8 }
  0x94   : > { %p4020_p3 = pnand %p4018_p1, %p4015_p9 }
  0x96   : > { %4023 = shalt.err (!%p4020_p3)
}
  0x97   : > { %s4024_s28 = scalar_lea.vmem %s446_s0, 16  ;;  %s4031_s17 = scalar_lea.vmem %s446_s0, 32 }
  0x98   : > { %p4025_p10 = scmp.ne.s32.totalorder %s446_s0, %s4024_s28  ;;  %p4032_p13 = scmp.lt.s32.totalorder %s446_s0, %s446_s0 }
  0x99   : > { %p4033_p0 = scmp.lt.s32.totalorder %s4031_s17, %s4024_s28 }
  0x9a   : > { %p4027_p11 = pnand %p4025_p10, %p4561_p7 }
  0x9b   : > { %p4034_p2 = por %p4033_p0, %p4032_p13 }
  0x9c   : > { %p4028_p12 = pneg %p4027_p11 }
  0x9e   : > { %p4035_p4 = pnand %p4034_p2, %p4028_p12 }
  0xa0   : > { %4038 = shalt.err (!%p4035_p4)
}
  0xa1   : > { %3605 = dma.hbm_to_vmem [thread:$0]  (!%p4545_p5), %s5597_s9, 16, %s446_s0, [#allocation22]  }
  0xa2   : > { %s4392_s12 = smov [#allocation11]   ;;  %s4393_s15 = smov [#allocation14]  }
  0xa3   : > { %s360_s23 = sshll.u32 %s4392_s12, 4  ;;  %s383_s21 = sshll.u32 %s4393_s15, 4  ;;  %s361_s23 = int_to_ptr.vmem [resolvable:$true] %s360_s23  ;;  %s384_s21 = int_to_ptr.vmem [resolvable:$true] %s383_s21 }
  0xa4   : > { %s5639_s2 = sld [smem:[#allocation44_spill]] }
  0xaa   : > { %s4039_s20 = scalar_lea.hbm %s5639_s2, 16 }
  0xab   : > { %p4040_p6 = scmp.ne.s32.totalorder %s5639_s2, %s4039_s20  ;;  %p4046_p1 = scmp.lt.u32.totalorder %s4039_s20, %s5639_s2 }
  0xad   : > { %p4042_p8 = pnand %p4040_p6, %p4561_p7 }
  0xaf   : > { %p4043_p9 = pneg %p4042_p8 }
  0xb1   : > { %p4048_p3 = pnand %p4046_p1, %p4043_p9 }
  0xb3   : > { %4051 = shalt.err (!%p4048_p3)
}
  0xb4   : > { %s4052_s0 = scalar_lea.vmem %s361_s23, 16  ;;  %s4059_s1 = scalar_lea.vmem %s361_s23, 32 }
  0xb5   : > { %p4053_p10 = scmp.ne.s32.totalorder %s361_s23, %s4052_s0  ;;  %p4060_p13 = scmp.lt.s32.totalorder %s361_s23, %s361_s23 }
  0xb6   : > { %p4061_p0 = scmp.lt.s32.totalorder %s4059_s1, %s4052_s0 }
  0xb7   : > { %p4055_p11 = pnand %p4053_p10, %p4561_p7 }
  0xb8   : > { %p4062_p2 = por %p4061_p0, %p4060_p13 }
  0xb9   : > { %p4056_p12 = pneg %p4055_p11 }
  0xbb   : > { %p4063_p4 = pnand %p4062_p2, %p4056_p12 }
  0xbd   : > { %4066 = shalt.err (!%p4063_p4)
}
  0xbe   : > { %3584 = dma.hbm_to_vmem [thread:$0]  (!%p4545_p5), %s5639_s2, 16, %s361_s23, [#allocation10]  }
  0xbf   : > { %s5640_s4 = sld [smem:[#allocation46_spill]] }
  0xc5   : > { %s4067_s20 = scalar_lea.hbm %s5640_s4, 1024 }
  0xc6   : > { %p4068_p6 = scmp.ne.s32.totalorder %s5640_s4, %s4067_s20  ;;  %p4074_p1 = scmp.lt.u32.totalorder %s4067_s20, %s5640_s4 }
  0xc8   : > { %p4070_p8 = pnand %p4068_p6, %p4561_p7 }
  0xca   : > { %p4071_p9 = pneg %p4070_p8 }
  0xcc   : > { %p4076_p3 = pnand %p4074_p1, %p4071_p9 }
  0xce   : > { %4079 = shalt.err (!%p4076_p3)
}
  0xcf   : > { %s4080_s0 = scalar_lea.vmem %s384_s21, 1024  ;;  %p4088_p13 = scmp.lt.s32.totalorder %s384_s21, %s384_s21 }
  0xd0   : > { %p4081_p10 = scmp.ne.s32.totalorder %s384_s21, %s4080_s0  ;;  %p4089_p0 = scmp.lt.s32.totalorder %s4080_s0, %s4080_s0 }
  0xd2   : > { %p4083_p11 = pnand %p4081_p10, %p4561_p7  ;;  %p4090_p2 = por %p4089_p0, %p4088_p13 }
  0xd4   : > { %p4084_p12 = pneg %p4083_p11 }
  0xd6   : > { %p4091_p4 = pnand %p4090_p2, %p4084_p12 }
  0xd8   : > { %4094 = shalt.err (!%p4091_p4)
}
  0xd9   : > { %s4394_s23 = smov 64   ;;  %s4395_s1 = smov 4  }
  0xda   : > { %3590 = dma.hbm_to_vmem [thread:$0]  (!%p4545_p5), %s5640_s4, 1024, %s384_s21, [#allocation13], %s4394_s23, %s4394_s23, %s4395_s1  }
  0xdb   : > { %s4396_s18 = smov [#allocation17]   ;;  %s4397_s20 = smov [#allocation20]  }
  0xdc   : > { %s407_s27 = sshll.u32 %s4396_s18, 4  ;;  %s431_s16 = sshll.u32 %s4397_s20, 4  ;;  %s408_s27 = int_to_ptr.vmem [resolvable:$true] %s407_s27  ;;  %s432_s16 = int_to_ptr.vmem [resolvable:$true] %s431_s16 }
  0xdd   : > { %s5641_s6 = sld [smem:[#allocation48_spill]] }
  0xe3   : > { %s4095_s22 = scalar_lea.hbm %s5641_s6, 1024 }
  0xe4   : > { %p4096_p6 = scmp.ne.s32.totalorder %s5641_s6, %s4095_s22  ;;  %p4102_p1 = scmp.lt.u32.totalorder %s4095_s22, %s5641_s6 }
  0xe6   : > { %p4098_p8 = pnand %p4096_p6, %p4561_p7 }
  0xe8   : > { %p4099_p9 = pneg %p4098_p8 }
  0xea   : > { %p4104_p3 = pnand %p4102_p1, %p4099_p9 }
  0xec   : > { %4107 = shalt.err (!%p4104_p3)
}
  0xed   : > { %s4108_s21 = scalar_lea.vmem %s408_s27, 1024  ;;  %p4116_p13 = scmp.lt.s32.totalorder %s408_s27, %s408_s27 }
  0xee   : > { %p4109_p10 = scmp.ne.s32.totalorder %s408_s27, %s4108_s21  ;;  %p4117_p0 = scmp.lt.s32.totalorder %s4108_s21, %s4108_s21 }
  0xf0   : > { %p4111_p11 = pnand %p4109_p10, %p4561_p7  ;;  %p4118_p2 = por %p4117_p0, %p4116_p13 }
  0xf2   : > { %p4112_p12 = pneg %p4111_p11 }
  0xf4   : > { %p4119_p4 = pnand %p4118_p2, %p4112_p12 }
  0xf6   : > { %4122 = shalt.err (!%p4119_p4)
}
  0xf7   : > { %3596 = dma.hbm_to_vmem [thread:$0]  (!%p4545_p5), %s5641_s6, 1024, %s408_s27, [#allocation16], %s4394_s23, %s4394_s23, %s4395_s1  }
  0xf8   : > { %s4123_s15 = scalar_lea.hbm %s5596_s8, 1024 }
  0xf9   : > { %p4124_p6 = scmp.ne.s32.totalorder %s5596_s8, %s4123_s15  ;;  %p4130_p1 = scmp.lt.u32.totalorder %s4123_s15, %s5596_s8 }
  0xfb   : > { %p4126_p8 = pnand %p4124_p6, %p4561_p7 }
  0xfd   : > { %p4127_p9 = pneg %p4126_p8 }
  0xff   : > { %p4132_p3 = pnand %p4130_p1, %p4127_p9 }
 0x101   : > { %4135 = shalt.err (!%p4132_p3)
}
 0x102   : > { %s4136_s22 = scalar_lea.vmem %s432_s16, 1024  ;;  %p4144_p13 = scmp.lt.s32.totalorder %s432_s16, %s432_s16 }
 0x103   : > { %p4137_p10 = scmp.ne.s32.totalorder %s432_s16, %s4136_s22  ;;  %p4145_p0 = scmp.lt.s32.totalorder %s4136_s22, %s4136_s22 }
 0x105   : > { %p4139_p11 = pnand %p4137_p10, %p4561_p7  ;;  %p4146_p2 = por %p4145_p0, %p4144_p13 }
 0x107   : > { %p4140_p12 = pneg %p4139_p11 }
 0x109   : > { %p4147_p4 = pnand %p4146_p2, %p4140_p12 }
 0x10b   : > { %4150 = shalt.err (!%p4147_p4)
}
 0x10c   : > { %3602 = dma.hbm_to_vmem [thread:$0]  (!%p4545_p5), %s5596_s8, 1024, %s432_s16, [#allocation19], %s4394_s23, %s4394_s23, %s4395_s1  }
 0x10d   : > { %s4398_s21 = smov [#allocation23]   ;;  %s4399_s3 = smov [#allocation24]  }
 0x10e   : > { %s455_s2 = sshll.u32 %s4398_s21, 4  ;;  %s469_s5 = sshll.u32 %s4399_s3, 4  ;;  %s456_s2 = int_to_ptr.vmem [resolvable:$true] %s455_s2  ;;  %s470_s5 = int_to_ptr.vmem [resolvable:$true] %s469_s5 }
 0x10f   : > { %s4151_s18 = scalar_lea.hbm %s5598_s10, 1024 }
 0x110   : > { %p4152_p6 = scmp.ne.s32.totalorder %s5598_s10, %s4151_s18  ;;  %p4158_p1 = scmp.lt.u32.totalorder %s4151_s18, %s5598_s10 }
 0x112   : > { %p4154_p8 = pnand %p4152_p6, %p4561_p7 }
 0x114   : > { %p4155_p9 = pneg %p4154_p8 }
 0x116   : > { %p4160_p3 = pnand %p4158_p1, %p4155_p9 }
 0x118   : > { %4163 = shalt.err (!%p4160_p3)
}
 0x119   : > { %s4164_s16 = scalar_lea.vmem %s456_s2, 1024  ;;  %p4172_p13 = scmp.lt.s32.totalorder %s456_s2, %s456_s2 }
 0x11a   : > { %p4165_p10 = scmp.ne.s32.totalorder %s456_s2, %s4164_s16  ;;  %p4173_p0 = scmp.lt.s32.totalorder %s4164_s16, %s4164_s16 }
 0x11c   : > { %p4167_p11 = pnand %p4165_p10, %p4561_p7  ;;  %p4174_p2 = por %p4173_p0, %p4172_p13 }
 0x11e   : > { %p4168_p12 = pneg %p4167_p11 }
 0x120   : > { %p4175_p4 = pnand %p4174_p2, %p4168_p12 }
 0x122   : > { %4178 = shalt.err (!%p4175_p4)
}
 0x123   : > { %3608 = dma.hbm_to_vmem [thread:$0]  (!%p4545_p5), %s5598_s10, 1024, %s456_s2, [#allocation22], %s4394_s23, %s4394_s23, %s4395_s1  }
 0x124   : > { %s4179_s12 = scalar_lea.hbm %s5599_s11, 16 }
 0x125   : > { %p4180_p6 = scmp.ne.s32.totalorder %s5599_s11, %s4179_s12  ;;  %p4186_p1 = scmp.lt.u32.totalorder %s4179_s12, %s5599_s11 }
 0x127   : > { %p4182_p8 = pnand %p4180_p6, %p4561_p7 }
 0x129   : > { %p4183_p9 = pneg %p4182_p8 }
 0x12b   : > { %p4188_p3 = pnand %p4186_p1, %p4183_p9 }
 0x12d   : > { %4191 = shalt.err (!%p4188_p3)
}
 0x12e   : > { %s4192_s17 = scalar_lea.vmem %s470_s5, 16  ;;  %s4199_s23 = scalar_lea.vmem %s470_s5, 32 }
 0x12f   : > { %p4193_p10 = scmp.ne.s32.totalorder %s470_s5, %s4192_s17  ;;  %p4200_p13 = scmp.lt.s32.totalorder %s470_s5, %s470_s5 }
 0x130   : > { %p4201_p0 = scmp.lt.s32.totalorder %s4199_s23, %s4192_s17 }
 0x131   : > { %p4195_p11 = pnand %p4193_p10, %p4561_p7 }
 0x132   : > { %p4202_p2 = por %p4201_p0, %p4200_p13 }
 0x133   : > { %p4196_p12 = pneg %p4195_p11 }
 0x135   : > { %p4203_p4 = pnand %p4202_p2, %p4196_p12 }
 0x137   : > { %4206 = shalt.err (!%p4203_p4)
}
 0x138   : > { %s5642_s19 = sld [smem:[#allocation40_spill]]  ;;  %s5643_s22 = sld [smem:[#allocation37_spill]] }
 0x139   : > { %3611 = dma.hbm_to_vmem [thread:$0]  (!%p4545_p5), %s5599_s11, 16, %s470_s5, [#allocation25]  }
 0x13a   : > { %s2876_s16 = sadd.s32 4294967294, %s4383_s13   ;;  %s5644_s27 = sld [smem:[#allocation36_spill]] }
 0x13b   : > { %s43_s14 = sadd.s32 1, %s4375_s29  ;;  %s46_s0 = sadd.s32 1, %s4379_s30 }
 0x13c   : > { %p44_p7 = scmp.ge.s32.totalorder %s43_s14, 2  ;;  %s5645_s21 = sld [smem:[#allocation35_spill]] }
 0x13d   : > { %s53_s3 = sadd.s32 1, %s4363_s26  ;;  %p60_p6 = scmp.ne.s32.totalorder %s4363_s26, %s4359_s25 }
 0x13e   : > { %p61_p8 = scmp.eq.s32.totalorder %s4383_s13, 0  ;;  %s5683_s14 = smov (%p44_p7, %s43_s14), 0 }
 0x13f   : > { %s5685_s0 = smov (!%p44_p7, %s46_s0), %s4379_s30  ;;  %p66_p5 = scmp.ne.s32.totalorder %s4359_s25, %s4355_s24 }
 0x140   : > { %p4788_p9 = por %p61_p8, %p60_p6  ;;  %p48_p1 = scmp.ge.s32.totalorder %s5685_s0, 2 }
 0x141   : > { %s308_s12 = ssub.s32 %s4375_s29, %s5683_s14  ;;  %p5647_p3 = scmp.ne.s32.totalorder %s5642_s19, 0 }
 0x142   : > { %s312_s18 = sadd.s32 1, %s5643_s22  ;;  %s5687_s0 = smov (%p48_p1, %s5685_s0), 0 }
 0x143   : > { %p4798_p10 = por %p5647_p3, %p66_p5  ;;  %p322_p11 = scmp.ne.s32.totalorder %s5643_s22, %s5644_s27 }
 0x144   : > { %s5649_s20 = sadd.s32 4294967295, %s4383_s13   ;;  %s50_s28 = ssub.s32 %s4379_s30, %s5687_s0 }
 0x145   : > { %p323_p12 = scmp.eq.s32.totalorder %s5649_s20, 3  ;;  %p328_p13 = scmp.ne.s32.totalorder %s5644_s27, %s5645_s21 }
 0x146   : > { %p51_p0 = scmp.eq.s32.totalorder %s50_s28, 0  ;;  %s309_s24 = sor.u32 %s308_s12, %s50_s28 }
 0x147   : > { %p310_p2 = scmp.eq.s32.totalorder %s309_s24, 0  ;;  %p4813_p4 = por %p323_p12, %p322_p11 }
 0x148   : > { %s4818_s23 = scalar_select %p51_p0, %s4363_s26, %s53_s3  }
 0x149   : > { %s5650_s17 = scalar_select %p4813_p4, 1, 0 }
 0x14a   : > { %s5689_s22 = smov (!%p310_p2, %s5643_s22), %s312_s18  ;;  %p329_p7 = scmp.eq.s32.totalorder %s2876_s16, 3 }
 0x14b   : > { %p3631_p6 = scmp.lt.s32.totalorder %s4383_s13, 4  ;;  %s480_s1 = sand.u32 1, %s4363_s26  }
 0x14c   : > { %s2955_s2 = sshll.u32 %s4379_s30, 12  ;;  %p4826_p8 = por %p329_p7, %p328_p13 }
 0x14d   : > { %s2890_s27 = sshll.u32 %s480_s1, 8  ;;  %s5652_s20 = sld [smem:[#allocation42_spill]] }
 0x14e   : > { %s5651_s19 = scalar_select %p4826_p8, 1, 0 }
 0x14f   : > { %p4837_p5 = pnand %p3631_p6, %p4788_p9  ;;  %s484_s3 = scalar_lea.vmem [#allocation6], %s2890_s27 }
 0x150   : > { %s491_s18 = sshll.u32 %s484_s3, 4  ;;  %s4843_s24 = scalar_lea.sflag [#allocation7], %s480_s1  ;;  %s4841_s18 = int_to_ptr.vmem [resolvable:$true] %s491_s18 }
 0x151   : > { %p4209_p3 = pneg %p4837_p5 }
 0x153   : > { %s4833_s28 = scalar_lea.hbm %s5652_s20, %s2955_s2  ;;  %s4212_s12 = scalar_lea.hbm %s5652_s20, 8192 }
 0x154   : > { %s4207_s21 = scalar_lea.hbm %s4833_s28, 4096  ;;  %p4213_p9 = scmp.lt.u32.totalorder %s4833_s28, %s5652_s20 }
 0x155   : > { %p4208_p1 = scmp.ne.s32.totalorder %s4833_s28, %s4207_s21  ;;  %p4214_p13 = scmp.lt.u32.totalorder %s4212_s12, %s4207_s21 }
 0x156   : > { %p4216_p2 = scmp.lt.u32.totalorder %s4207_s21, %s4833_s28 }
 0x157   : > { %p4210_p11 = pnand %p4209_p3, %p4208_p1  ;;  %p4215_p0 = por %p4214_p13, %p4213_p9 }
 0x159   : > { %p4211_p12 = pneg %p4210_p11  ;;  %p4217_p7 = por %p4216_p2, %p4215_p0 }
 0x15b   : > { %p4218_p6 = pnand %p4217_p7, %p4211_p12 }
 0x15d   : > { %4221 = shalt.err (!%p4218_p6)
}
 0x15e   : > { %s4222_s1 = scalar_lea.vmem %s4841_s18, 4096  ;;  %s4400_s27 = smov [#allocation6]  }
 0x15f   : > { %p4223_p1 = scmp.ne.s32.totalorder %s4841_s18, %s4222_s1  ;;  %s4227_s3 = sshll.u32 %s4400_s27, 4  ;;  %s4228_s3 = int_to_ptr.vmem [resolvable:$false] %s4227_s3 }
 0x160   : > { %s4229_s4 = scalar_lea.vmem %s4228_s3, 8192  ;;  %p4230_p4 = scmp.lt.s32.totalorder %s4841_s18, %s4228_s3 }
 0x161   : > { %p4225_p11 = pnand %p4223_p1, %p4209_p3  ;;  %p4231_p9 = scmp.lt.s32.totalorder %s4229_s4, %s4222_s1 }
 0x163   : > { %p4226_p8 = pneg %p4225_p11  ;;  %p4232_p13 = por %p4231_p9, %p4230_p4 }
 0x165   : > { %p4233_p0 = pnand %p4232_p13, %p4226_p8 }
 0x167   : > { %4236 = shalt.err (!%p4233_p0)
}
 0x168   : > { %s5654_s6 = smov 8   ;;  %s5655_s21 = smov 128  }
 0x169   : > { %3615 = dma.hbm_to_vmem [thread:$0]  (!%p4837_p5), %s4833_s28, 4096, %s4841_s18, %s4843_s24, %s5655_s21, %s5655_s21, %s5654_s6  }
 0x16a   : > { %s5656_s5 = sld [smem:[#allocation41_spill]] }
 0x170   : > { %p5657_p3 = scmp.ne.s32.totalorder %s5656_s5, 0 }
 0x171   : > { %s505_s2 = sand.u32 (!%p5657_p3), 1, %s4359_s25  }
 0x172   : > { %503 = sbr.rel (%p5657_p3) target bundleno = 2528 (0x9e0), region = 68  ;;  %s2894_s12 = sshll.u32 (!%p5657_p3), %s505_s2, 8 }
 0x173   : > { %s506_s1 = scalar_lea.sflag (!%p5657_p3), [#allocation7], %s505_s2  ;;  %s4877_s27 = scalar_lea.vmem (!%p5657_p3), [#allocation6], %s2894_s12 }
 0x179   : > { %4310 = dma.done.wait (%p4798_p10), %s506_s1, 4096  }
 0x17a   : > { %4312 = vsyncadd (%p4798_p10), %s506_s1, 4294963200  ;;  %s5658_s16 = sld [smem:[#allocation40_spill]] }
 0x180   : > { %p5659_p4 = scmp.ne.s32.totalorder %s5658_s16, 0 }
 0x182   : > { %4314 = dma.done.wait (%p5659_p4), [#allocation10], 32  }
 0x183   : > { %4316 = vsyncadd (%p5659_p4), [#allocation10], 4294967264 }
 0x184   : > { %4318 = dma.done.wait (%p5659_p4), [#allocation13], 1536  }
 0x185   : > { %4320 = vsyncadd (%p5659_p4), [#allocation13], 4294965760 }
 0x186   : > { %4322 = dma.done.wait (%p5659_p4), [#allocation16], 1040  }
 0x187   : > { %4324 = vsyncadd (%p5659_p4), [#allocation16], 4294966256 }
 0x188   : > { %4326 = dma.done.wait (%p5659_p4), [#allocation19], 1040  }
 0x189   : > { %4328 = vsyncadd (%p5659_p4), [#allocation19], 4294966256 }
 0x18a   : > { %4330 = dma.done.wait (%p5659_p4), [#allocation22], 1040  }
 0x18b   : > { %4332 = vsyncadd (%p5659_p4), [#allocation22], 4294966256 }
 0x18c   : > { %4334 = dma.done.wait (%p5659_p4), [#allocation25], 16  }
 0x18d   : > { %4336 = vsyncadd (%p5659_p4), [#allocation25], 4294967280  ;;  %s5660_s15 = sld [smem:[#allocation36_spill]]  ;;  %s5661_s3 = sld [smem:[#allocation38_spill]] }
 0x193   : > { %s591_s28 = sand.u32 1, %s5660_s15   ;;  %p2907_p10 = scmp.ne.s32.totalorder %s5661_s3, 0 }
 0x194   : > { %s2906_s18 = sshll.u32 %s591_s28, 7  ;;  %v4914_v0 = vld [vmem:[%s4877_s27 + $0x80] sm:$0xff] (!%p2907_p10)  ;;  %v4917_v1 = vld [vmem:[%s4877_s27 + $0x88] sm:$0xff] (!%p2907_p10)  ;;  %v4934_v8 = vld [vmem:[%s4877_s27 + $0x90] sm:$0xff] (!%p2907_p10)  ;;  %v4401_v10 = vmov (!%p2907_p10), 1.0   ;;  %vm4403_vm0 = vmmov (!%p2907_p10), 0  }
 0x195   : > { %s4910_s24 = scalar_lea.vmem [#allocation26], %s2906_s18  ;;  %599 = sbr.rel (%p2907_p10) target bundleno = 1386 (0x56a), region = 120  ;;  %v4920_v2 = vld [vmem:[%s4877_s27] sm:$0xff] (!%p2907_p10)  ;;  %v3426_v3 = vpack.c.bf16 (!%p2907_p10), %v4917_v1, %v4914_v0  ;;  %v4925_v4 = vld [vmem:[%s4877_s27 + $0x8] sm:$0xff] (!%p2907_p10)  ;;  %v718_v5 = vmul.f32 (!%p2907_p10), %v4914_v0, %v4914_v0  ;;  %v719_v6 = vmul.f32 (!%p2907_p10), %v4917_v1, %v4917_v1  ;;  %v4937_v9 = vld [vmem:[%s4877_s27 + $0x98] sm:$0xff] (!%p2907_p10)  ;;  %696 = vmatprep.mubr.f32.mxu0 (!%p2907_p10), %v4401_v10  ;;  %v720_v16 = vmul.f32 (!%p2907_p10), %v4934_v8, %v4934_v8 }
 0x196   : > { %v702_v7 = vmul.f32 (!%p2907_p10), %v4920_v2, %v4920_v2  ;;  %v3428_v11 = vpack.c.bf16 (!%p2907_p10), %v4925_v4, %v4920_v2  ;;  %v703_v12 = vmul.f32 (!%p2907_p10), %v4925_v4, %v4925_v4  ;;  %v3430_v13 = vpack.c.bf16 (!%p2907_p10), %v4937_v9, %v4934_v8  ;;  %v4947_v14 = vld [vmem:[%s4877_s27 + $0x10] sm:$0xff] (!%p2907_p10)  ;;  %v4950_v15 = vld [vmem:[%s4877_s27 + $0x18] sm:$0xff] (!%p2907_p10)  ;;  %v4955_v17 = vld [vmem:[%s4877_s27 + $0xa0] sm:$0xff] (!%p2907_p10)  ;;  %798 = vmatprep.mubr.f32.mxu1 (!%p2907_p10), %v4401_v10 }
 0x197   : > { %3427 = vmatprep.subr.bf16.mxu0 (!%p2907_p10), %v3426_v3  ;;  %v3458_v18 = vpack.c.bf16 (!%p2907_p10), %v719_v6, %v718_v5  ;;  %v721_v19 = vmul.f32 (!%p2907_p10), %v4937_v9, %v4937_v9  ;;  %v704_v20 = vmul.f32 (!%p2907_p10), %v4947_v14, %v4947_v14  ;;  %v4963_v21 = vld [vmem:[%s4877_s27 + $0xa8] sm:$0xff] (!%p2907_p10)  ;;  %v4966_v22 = vld [vmem:[%s4877_s27 + $0x20] sm:$0xff] (!%p2907_p10)  ;;  %v3432_v25 = vpack.c.bf16 (!%p2907_p10), %v4950_v15, %v4947_v14  ;;  %v4978_v28 = vld [vmem:[%s4877_s27 + $0xb0] sm:$0xff] (!%p2907_p10) }
 0x198   : > { %v4969_v23 = vld [vmem:[%s4877_s27 + $0x28] sm:$0xff] (!%p2907_p10)  ;;  %3429 = vmatpush3.bf16.msra.mxu0 (!%p2907_p10), %v3428_v11  ;;  %v3460_v24 = vpack.c.bf16 (!%p2907_p10), %v703_v12, %v702_v7  ;;  %v705_v26 = vmul.f32 (!%p2907_p10), %v4950_v15, %v4950_v15  ;;  %v3434_v27 = vpack.c.bf16 (!%p2907_p10), %v4963_v21, %v4955_v17  ;;  %v4981_v29 = vld [vmem:[%s4877_s27 + $0xb8] sm:$0xff] (!%p2907_p10)  ;;  %v722_v31 = vmul.f32 (!%p2907_p10), %v4955_v17, %v4955_v17  ;;  %v4992_v37 = vld [vmem:[%s4877_s27 + $0x30] sm:$0xff] (!%p2907_p10) }
 0x199   : > { %3459 = vmatprep.subr.bf16.mxu1 (!%p2907_p10), %v3458_v18  ;;  %3431 = vmatprep.subr.bf16.mxu0 (!%p2907_p10), %v3430_v13  ;;  %v3462_v30 = vpack.c.bf16 (!%p2907_p10), %v721_v19, %v720_v16  ;;  %v723_v32 = vmul.f32 (!%p2907_p10), %v4963_v21, %v4963_v21  ;;  %v706_v34 = vmul.f32 (!%p2907_p10), %v4966_v22, %v4966_v22  ;;  %v4995_v38 = vld [vmem:[%s4877_s27 + $0x38] sm:$0xff] (!%p2907_p10)  ;;  %v5004_v42 = vld [vmem:[%s4877_s27 + $0xc0] sm:$0xff] (!%p2907_p10)  ;;  %v5007_v43 = vld [vmem:[%s4877_s27 + $0xc8] sm:$0xff] (!%p2907_p10)  ;;  %vm955_vm1 = vcmask (!%p2907_p10), 261120  }
 0x19a   : > { %3461 = vmatpush3.bf16.msra.mxu1 (!%p2907_p10), %v3460_v24  ;;  %v3464_v33 = vpack.c.bf16 (!%p2907_p10), %v705_v26, %v704_v20  ;;  %v707_v35 = vmul.f32 (!%p2907_p10), %v4969_v23, %v4969_v23  ;;  %v724_v39 = vmul.f32 (!%p2907_p10), %v4978_v28, %v4978_v28  ;;  %v725_v40 = vmul.f32 (!%p2907_p10), %v4981_v29, %v4981_v29  ;;  %v5016_v48 = vld [vmem:[%s4877_s27 + $0x40] sm:$0xff] (!%p2907_p10)  ;;  %v5019_v50 = vld [vmem:[%s4877_s27 + $0x48] sm:$0xff] (!%p2907_p10)  ;;  %v5026_v53 = vld [vmem:[%s4877_s27 + $0xd0] sm:$0xff] (!%p2907_p10) }
 0x19b   : > { %3463 = vmatprep.subr.bf16.mxu1 (!%p2907_p10), %v3462_v30  ;;  %v3466_v36 = vpack.c.bf16 (!%p2907_p10), %v723_v32, %v722_v31  ;;  %v3436_v41 = vpack.c.bf16 (!%p2907_p10), %v4969_v23, %v4966_v22  ;;  %v3438_v44 = vpack.c.bf16 (!%p2907_p10), %v4981_v29, %v4978_v28  ;;  %v708_v46 = vmul.f32 (!%p2907_p10), %v4992_v37, %v4992_v37  ;;  %v5029_v54 = vld [vmem:[%s4877_s27 + $0xd8] sm:$0xff] (!%p2907_p10)  ;;  %v5036_v57 = vld [vmem:[%s4877_s27 + $0x50] sm:$0xff] (!%p2907_p10)  ;;  %v5046_v62 = vld [vmem:[%s4877_s27 + $0xe0] sm:$0xff] (!%p2907_p10) }
 0x19c   : > { %3433 = vmatpush3.bf16.msra.mxu0 %v3432_v25  ;;  %v3468_v45 = vpack.c.bf16 %v707_v35, %v706_v34  ;;  %v709_v47 = vmul.f32 %v4995_v38, %v4995_v38  ;;  %v3470_v49 = vpack.c.bf16 %v725_v40, %v724_v39  ;;  %v726_v51 = vmul.f32 %v5004_v42, %v5004_v42  ;;  %v5039_v58 = vld [vmem:[%s4877_s27 + $0x58] sm:$0xff]  ;;  %v5049_v63 = vld [vmem:[%s4877_s27 + $0xe8] sm:$0xff]  ;;  %v5060_v12 = vld [vmem:[%s4877_s27 + $0x60] sm:$0xff] }
 0x19d   : > { %3435 = vmatprep.subr.bf16.mxu0 %v3434_v27  ;;  %v727_v52 = vmul.f32 %v5007_v43, %v5007_v43  ;;  %v3440_v55 = vpack.c.bf16 %v4995_v38, %v4992_v37  ;;  %v3442_v56 = vpack.c.bf16 %v5007_v43, %v5004_v42  ;;  %v710_v60 = vmul.f32 %v5016_v48, %v5016_v48  ;;  %v5063_v13 = vld [vmem:[%s4877_s27 + $0x68] sm:$0xff]  ;;  %v5070_v20 = vld [vmem:[%s4877_s27 + $0xf0] sm:$0xff]  ;;  %v5073_v24 = vld [vmem:[%s4877_s27 + $0xf8] sm:$0xff] }
 0x19e   : > { %3465 = vmatpush3.bf16.msra.mxu1 %v3464_v33  ;;  %v3472_v59 = vpack.c.bf16 %v709_v47, %v708_v46  ;;  %v711_v61 = vmul.f32 %v5019_v50, %v5019_v50  ;;  %v728_v5 = vmul.f32 %v5026_v53, %v5026_v53  ;;  %v729_v6 = vmul.f32 %v5029_v54, %v5029_v54  ;;  %v5091_v39 = vld [vmem:[%s4877_s27 + $0x78] sm:$0xff] }
 0x19f   : > { %3467 = vmatprep.subr.bf16.mxu1 %v3466_v36  ;;  %v3474_v3 = vpack.c.bf16 %v727_v52, %v726_v51  ;;  %v3444_v7 = vpack.c.bf16 %v5019_v50, %v5016_v48  ;;  %v3446_v11 = vpack.c.bf16 %v5029_v54, %v5026_v53  ;;  %v712_v18 = vmul.f32 %v5036_v57, %v5036_v57  ;;  %v5088_v36 = vld [vmem:[%s4877_s27 + $0x70] sm:$0xff] }
 0x1a0   : > { %3437 = vmatpush3.bf16.msra.mxu0 %v3436_v41  ;;  %v3476_v16 = vpack.c.bf16 %v711_v61, %v710_v60  ;;  %v713_v19 = vmul.f32 %v5039_v58, %v5039_v58  ;;  %v3478_v25 = vpack.c.bf16 %v729_v6, %v728_v5  ;;  %v730_v26 = vmul.f32 %v5046_v62, %v5046_v62  ;;  %v805_v60 = vld [vmem:[#allocation12 + $0x8] sm:$0xff]  ;;  %v807_v5 = vld [vmem:[#allocation12 + $0x18] sm:$0xff] }
 0x1a1   : > { %3439 = vmatprep.subr.bf16.mxu0 %v3438_v44  ;;  %v731_v27 = vmul.f32 %v5049_v63, %v5049_v63  ;;  %v3448_v30 = vpack.c.bf16 %v5039_v58, %v5036_v57  ;;  %v3450_v31 = vpack.c.bf16 %v5049_v63, %v5046_v62  ;;  %v714_v33 = vmul.f32 %v5060_v12, %v5060_v12 }
 0x1a2   : > { %3469 = vmatpush3.bf16.msra.mxu1 %v3468_v45  ;;  %v3480_v32 = vpack.c.bf16 %v713_v19, %v712_v18  ;;  %v715_v34 = vmul.f32 %v5063_v13, %v5063_v13  ;;  %v732_v40 = vmul.f32 %v5070_v20, %v5070_v20  ;;  %v733_v41 = vmul.f32 %v5073_v24, %v5073_v24 }
 0x1a3   : > { %3471 = vmatprep.subr.bf16.mxu1 %v3470_v49  ;;  %v3482_v35 = vpack.c.bf16 %v731_v27, %v730_v26  ;;  %v3452_v44 = vpack.c.bf16 %v5063_v13, %v5060_v12  ;;  %v3454_v45 = vpack.c.bf16 %v5073_v24, %v5070_v20  ;;  %v716_v47 = vmul.f32 %v5088_v36, %v5088_v36  ;;  %v3753_v26 = vld [vmem:[#allocation17] sm:$0xff]  }
 0x1a4   : > { %3441 = vmatpush3.bf16.msra.mxu0 %v3440_v55  ;;  %v3484_v46 = vpack.c.bf16 %v715_v34, %v714_v33  ;;  %v717_v49 = vmul.f32 %v5091_v39, %v5091_v39  ;;  %v3486_v51 = vpack.c.bf16 %v733_v41, %v732_v40  ;;  %v3456_v52 = vpack.c.bf16 %v5091_v39, %v5088_v36  ;;  %v3754_v27 = vld [vmem:[#allocation20] sm:$0xff]  }
 0x1a5   : > { %3443 = vmatprep.subr.bf16.mxu0 %v3442_v56  ;;  %v4402_v56 = vmov 0.0|0.0  }
 0x1a6   : > { %3473 = vmatpush3.bf16.msra.mxu1 %v3472_v59  ;;  %v3488_v55 = vpack.c.bf16 %v717_v49, %v716_v47  ;;  %v804_v59 = vld [vmem:[#allocation12] sm:$0xff]  ;;  %v3756_v47 = vld [vmem:[#allocation20 + $0x8] sm:$0xff]  }
 0x1a7   : > { %3475 = vmatprep.subr.bf16.mxu1 %v3474_v3  ;;  %v3491_v61 = vpack.c.bf16 %v805_v60, %v804_v59  ;;  %v806_v3 = vld [vmem:[#allocation12 + $0x10] sm:$0xff]  ;;  %v3762_v59 = vld [vmem:[#allocation20 + $0x20] sm:$0xff]  }
 0x1a8   : > { %3445 = vmatpush3.bf16.msra.mxu0 %v3444_v7  ;;  %v3494_v6 = vpack.c.bf16 %v807_v5, %v806_v3  ;;  %v4404_v7 = vmov 0.0   ;;  %v3757_v49 = vld [vmem:[#allocation17 + $0x10] sm:$0xff]   ;;  %v3763_v60 = vld [vmem:[#allocation17 + $0x28] sm:$0xff]  }
 0x1a9   : > { %3447 = vmatprep.subr.bf16.mxu0 %v3446_v11  ;;  %v3765_v3 = vld [vmem:[#allocation17 + $0x30] sm:$0xff]  }
 0x1aa   : > { %3477 = vmatpush3.bf16.msra.mxu1 %v3476_v16  ;;  %v3766_v5 = vld [vmem:[#allocation20 + $0x30] sm:$0xff]  }
 0x1ab   : > { %3479 = vmatprep.subr.bf16.mxu1 %v3478_v25 }
 0x1ac   : > { %3449 = vmatpush3.bf16.msra.mxu0 %v3448_v30 }
 0x1ad   : > { %3451 = vmatprep.subr.bf16.mxu0 %v3450_v31 }
 0x1ae   : > { %3481 = vmatpush3.bf16.msra.mxu1 %v3480_v32 }
 0x1af   : > { %3483 = vmatprep.subr.bf16.mxu1 %v3482_v35 }
 0x1b0   : > { %3453 = vmatpush3.bf16.msra.mxu0 %v3452_v44 }
 0x1b1   : > { %3455 = vmatprep.subr.bf16.mxu0 %v3454_v45 }
 0x1b2   : > { %3485 = vmatpush3.bf16.msra.mxu1 %v3484_v46  ;;  %v3755_v46 = vld [vmem:[#allocation17 + $0x8] sm:$0xff]  }
 0x1b3   : > { %3487 = vmatprep.subr.bf16.mxu1 %v3486_v51  ;;  %v3758_v51 = vld [vmem:[#allocation20 + $0x10] sm:$0xff]  }
 0x1b4   : > { %3457 = vmatpush3.bf16.msra.mxu0 %v3456_v52  ;;  %v3759_v52 = vld [vmem:[#allocation17 + $0x18] sm:$0xff]  }
 0x1b5   : > { %3490 = vmatprep.subr.bf16.mxu0 %v4402_v56 }
 0x1b6   : > { %3489 = vmatpush3.bf16.msra.mxu1 %v3488_v55  ;;  %v3760_v55 = vld [vmem:[#allocation20 + $0x18] sm:$0xff]  }
 0x1b7   : > { %697 = vmatmul.mubr.f32.vlgmr.msra.gmra.mrb[0].mxu0 %v4401_v10  ;;  %3496 = vmatprep.subr.bf16.mxu1 %v4402_v56 }
 0x1b8   : > { %3230 = vmatprep.mubr.msk.f32.mxu0 %vm4403_vm0, %v4404_v7 }
 0x1b9   : > { %799 = vmatmul.mubr.f32.vlgmr.msra.gmra.mrb[0].mxu1 %v4401_v10 }
 0x1ba   : > { %3241 = vmatprep.mubr.msk.f32.mxu1 %vm4403_vm0, %v4404_v7 }
 0x1bd   : > { %3492 = vmatpush3.bf16.xpose.msra.mxu0 %v3491_v61 }
 0x1be   : > { %3493 = vmatprep.subr.bf16.mxu0 %v4402_v56 }
 0x1bf   : > { %3498 = vmatpush3.bf16.xpose.msra.mxu1 %v3491_v61 }
 0x1c0   : > { %3499 = vmatprep.subr.bf16.mxu1 %v4402_v56 }
 0x1c5   : > { %3495 = vmatpush3.bf16.xpose.msra.mxu0 %v3494_v6 }
 0x1c6   : > { %3502 = vmatprep.subr.bf16.mxu0 %v4402_v56 }
 0x1c7   : > { %3501 = vmatpush3.bf16.xpose.msra.mxu1 %v3494_v6 }
 0x1c8   : > { %3508 = vmatprep.subr.bf16.mxu1 %v4402_v56 }
 0x28a   : > { %v2988_v11 = vpop.f32.mrb[0].mxu0 }
 0x28b   : > { %v2989_v10 = vpop.f32.mrb[1].mxu0 }
 0x28c   : > { %v2990_v16 = vadd.f32 %v2989_v10, %v2988_v11  ;;  %v3023_v18 = vpop.f32.mrb[0].mxu1 }
 0x28d   : > { %v3024_v19 = vpop.f32.mrb[1].mxu1 }
 0x28e   : > { %v3025_v25 = vadd.f32 %v3024_v19, %v3023_v18  ;;  %3231 = vmatmul.mubr.f32.vlgmr.msra.gmra.mrb[2].mxu0 %v2990_v16  ;;  %v1109_v16 = vlaneseq  ;;  %v1102_v19 = vld [vmem:[#allocation9] sm:$0x1] }
 0x28f   : > { %3504 = vmatpush3.bf16.msra.mxu0 %v3491_v61  ;;  %3252 = vmatprep.mubr.msk.f32.mxu0 %vm4403_vm0, %v4404_v7 }
 0x290   : > { %3242 = vmatmul.mubr.f32.vlgmr.msra.gmra.mrb[2].mxu1 %v3025_v25  ;;  %3505 = vmatprep.subr.bf16.mxu0 %v4402_v56  ;;  %v1110_v18 = vshrl.u32 %v1109_v16, 7 }
 0x291   : > { %3510 = vmatpush3.bf16.msra.mxu1 %v3491_v61  ;;  %3263 = vmatprep.mubr.msk.f32.mxu1 %vm4403_vm0, %v4404_v7  ;;  %v3764_v61 = vld [vmem:[#allocation20 + $0x28] sm:$0xff]   ;;  %v3768_v7 = vld [vmem:[#allocation20 + $0x38] sm:$0xff]  }
 0x292   : > { %3511 = vmatprep.subr.bf16.mxu1 %v4402_v56  ;;  %v3761_v56 = vld [vmem:[#allocation17 + $0x20] sm:$0xff]   ;;  %v1111_v25 = vsub.s32 0, %v1110_v18 }
 0x293   : > { %3507 = vmatpush3.bf16.msra.mxu0 %v3494_v6 }
 0x294   : > { %3266 = vmatprep.subr.bf16.mxu0 %v3753_v26 }
 0x295   : > { %3513 = vmatpush3.bf16.msra.mxu1 %v3494_v6  ;;  %v3767_v6 = vld [vmem:[#allocation17 + $0x38] sm:$0xff]  }
 0x296   : > { %3314 = vmatprep.subr.bf16.mxu1 %v3754_v27 }
 0x361   : > { %v874_v30 = vpop.f32.mrb[2].mxu0 }
 0x362   : > { %v879_v31 = vmul.f32 0.0009765625, %v874_v30  ;;  %v3232_v32 = vpop.f32.mrb[3].mxu0 }
 0x363   : > { %v946_v33 = vpop.f32.mrb[2].mxu1 }
 0x364   : > { %v951_v34 = vmul.f32 %v879_v31, %v879_v31  ;;  %v950_v35 = vmul.f32 0.0009765625, %v946_v33  ;;  %v3243_v40 = vpop.f32.mrb[3].mxu1  ;;  %3253 = vmatmul.mubr.msk.f32.vlgmr.msra.gmra.mrb[4].mxu0 %vm955_vm1, %v879_v31  ;;  %v1104_v31 = vld [vmem:[#allocation11] sm:$0x1] }
 0x365   : > { %3267 = vmatpush3.bf16.msra.mxu0 %v3753_v26 }
 0x366   : > { %v952_v41 = vsub.f32 %v950_v35, %v951_v34  ;;  %3268 = vmatprep.subr.bf16.mxu0 %v3755_v46 }
 0x368   : > { %v953_v44 = vadd.f32 1e-05, %v952_v41 }
 0x369   : > { %3269 = vmatpush3.bf16.msra.mxu0 %v3755_v46 }
 0x36a   : > { %3769 = vrsqrt.f32 %v953_v44  ;;  %3270 = vmatprep.subr.bf16.mxu0 %v3757_v49 }
 0x36d   : > { %3271 = vmatpush3.bf16.msra.mxu0 %v3757_v49 }
 0x36e   : > { %3272 = vmatprep.subr.bf16.mxu0 %v3759_v52 }
 0x371   : > { %3273 = vmatpush3.bf16.msra.mxu0 %v3759_v52 }
 0x372   : > { %3274 = vmatprep.subr.bf16.mxu0 %v3761_v56 }
 0x374   : > { %v3770_v45 = vpop.eup %3769 }
 0x375   : > { %3264 = vmatmul.mubr.msk.f32.vlgmr.msra.gmra.mrb[4].mxu1 %vm955_vm1, %v3770_v45  ;;  %3275 = vmatpush3.bf16.msra.mxu0 %v3761_v56 }
 0x376   : > { %3315 = vmatpush3.bf16.msra.mxu1 %v3754_v27  ;;  %3276 = vmatprep.subr.bf16.mxu0 %v3763_v60 }
 0x377   : > { %3316 = vmatprep.subr.bf16.mxu1 %v3756_v47 }
 0x379   : > { %3277 = vmatpush3.bf16.msra.mxu0 %v3763_v60 }
 0x37a   : > { %3317 = vmatpush3.bf16.msra.mxu1 %v3756_v47  ;;  %3278 = vmatprep.subr.bf16.mxu0 %v3765_v3 }
 0x37b   : > { %3318 = vmatprep.subr.bf16.mxu1 %v3758_v51 }
 0x37d   : > { %3279 = vmatpush3.bf16.msra.mxu0 %v3765_v3 }
 0x37e   : > { %3319 = vmatpush3.bf16.msra.mxu1 %v3758_v51  ;;  %3280 = vmatprep.subr.bf16.mxu0 %v3767_v6 }
 0x37f   : > { %3320 = vmatprep.subr.bf16.mxu1 %v3760_v55 }
 0x381   : > { %3281 = vmatpush3.bf16.msra.mxu0 %v3767_v6 }
 0x382   : > { %3321 = vmatpush3.bf16.msra.mxu1 %v3760_v55 }
 0x383   : > { %3322 = vmatprep.subr.bf16.mxu1 %v3762_v59 }
 0x386   : > { %3323 = vmatpush3.bf16.msra.mxu1 %v3762_v59 }
 0x387   : > { %3324 = vmatprep.subr.bf16.mxu1 %v3764_v61 }
 0x38a   : > { %3325 = vmatpush3.bf16.msra.mxu1 %v3764_v61 }
 0x38b   : > { %3326 = vmatprep.subr.bf16.mxu1 %v3766_v5 }
 0x38e   : > { %3327 = vmatpush3.bf16.msra.mxu1 %v3766_v5 }
 0x38f   : > { %3328 = vmatprep.subr.bf16.mxu1 %v3768_v7 }
 0x392   : > { %3329 = vmatpush3.bf16.msra.mxu1 %v3768_v7 }
 0x437   : > { %v1025_v11 = vpop.f32.mrb[4].mxu0 }
 0x438   : > { %v3254_v10 = vpop.f32.mrb[5].mxu0 }
 0x448   : > { %v1098_v26 = vpop.f32.mrb[4].mxu1 }
 0x449   : > { %v1103_v27 = vmul.f32 %v1102_v19, %v1098_v26  ;;  %v3265_v30 = vpop.f32.mrb[5].mxu1 }
 0x44b   : > { %v1105_v32 = vmul.f32 %v1103_v27, %v1025_v11  ;;  %1107 = vst [vmem:[#allocation2] sm:$0x1] %v1103_v27  ;;  %v5113_v33 = vrot.slane %v1103_v27, %v1111_v25 }
 0x44d   : > { %v1106_v34 = vsub.f32 %v1104_v31, %v1105_v32  ;;  %v1113_v35 = vmul.f32 %v5113_v33, %v4920_v2  ;;  %v1114_v40 = vmul.f32 %v5113_v33, %v4925_v4  ;;  %v1115_v41 = vmul.f32 %v5113_v33, %v4947_v14 }
 0x44e   : > { %v1116_v44 = vmul.f32 %v5113_v33, %v4950_v15  ;;  %v1129_v45 = vmul.f32 %v5113_v33, %v4914_v0  ;;  %v1130_v46 = vmul.f32 %v5113_v33, %v4917_v1  ;;  %v1117_v47 = vmul.f32 %v5113_v33, %v4966_v22 }
 0x44f   : > { %1108 = vst [vmem:[#allocation3] sm:$0x1] %v1106_v34  ;;  %v5129_v2 = vrot.slane %v1106_v34, %v1111_v25  ;;  %v1118_v4 = vmul.f32 %v5113_v33, %v4969_v23  ;;  %v1119_v14 = vmul.f32 %v5113_v33, %v4992_v37  ;;  %v1120_v15 = vmul.f32 %v5113_v33, %v4995_v38 }
 0x450   : > { %v1121_v0 = vmul.f32 %v5113_v33, %v5016_v48  ;;  %v1122_v1 = vmul.f32 %v5113_v33, %v5019_v50  ;;  %v1123_v22 = vmul.f32 %v5113_v33, %v5036_v57  ;;  %v1124_v49 = vmul.f32 %v5113_v33, %v5039_v58 }
 0x451   : > { %v1151_v23 = vadd.f32 %v5129_v2, %v1113_v35  ;;  %v1152_v51 = vadd.f32 %v5129_v2, %v1114_v40  ;;  %v1153_v37 = vadd.f32 %v5129_v2, %v1115_v41  ;;  %v1154_v38 = vadd.f32 %v5129_v2, %v1116_v44 }
 0x452   : > { %v1155_v52 = vadd.f32 %v5129_v2, %v1117_v47  ;;  %v1156_v48 = vadd.f32 %v5129_v2, %v1118_v4  ;;  %v1157_v50 = vadd.f32 %v5129_v2, %v1119_v14  ;;  %v1158_v55 = vadd.f32 %v5129_v2, %v1120_v15 }
 0x453   : > { %v1183_v57 = vpack.c.bf16 %v1152_v51, %v1151_v23  ;;  %v1184_v56 = vpack.c.bf16 %v1154_v38, %v1153_v37  ;;  %v1159_v58 = vadd.f32 %v5129_v2, %v1121_v0  ;;  %v1160_v59 = vadd.f32 %v5129_v2, %v1122_v1 }
 0x454   : > { %v1185_v60 = vpack.c.bf16 %v1156_v48, %v1155_v52  ;;  %v1186_v61 = vpack.c.bf16 %v1158_v55, %v1157_v50  ;;  %v1161_v3 = vadd.f32 %v5129_v2, %v1123_v22  ;;  %v1162_v5 = vadd.f32 %v5129_v2, %v1124_v49 }
 0x455   : > { %3282 = vmatprep.mubr.bf16.mxu0 %v1183_v57  ;;  %3330 = vmatprep.mubr.bf16.mxu1 %v1183_v57  ;;  %v1187_v6 = vpack.c.bf16 %v1160_v59, %v1159_v58  ;;  %v1125_v7 = vmul.f32 %v5113_v33, %v5060_v12  ;;  %v1126_v11 = vmul.f32 %v5113_v33, %v5063_v13 }
 0x456   : > { %3283 = vmatmul.mubr.bf16.vlgmr.msra.gmra.mrb[8].mxu0 %v1184_v56  ;;  %3331 = vmatmul.mubr.bf16.vlgmr.msra.gmra.mrb[8].mxu1 %v1184_v56  ;;  %v1188_v10 = vpack.c.bf16 %v1162_v5, %v1161_v3  ;;  %v1127_v16 = vmul.f32 %v5113_v33, %v5088_v36  ;;  %v1128_v18 = vmul.f32 %v5113_v33, %v5091_v39 }
 0x457   : > { %3286 = vmatprep.mubr.bf16.mxu0 %v1185_v60  ;;  %3334 = vmatprep.mubr.bf16.mxu1 %v1185_v60  ;;  %v1163_v19 = vadd.f32 %v5129_v2, %v1125_v7  ;;  %v1164_v25 = vadd.f32 %v5129_v2, %v1126_v11  ;;  %v1167_v12 = vadd.f32 %v5129_v2, %v1129_v45 }
 0x458   : > { %v1165_v26 = vadd.f32 %v5129_v2, %v1127_v16  ;;  %v1166_v13 = vadd.f32 %v5129_v2, %v1128_v18  ;;  %v1168_v27 = vadd.f32 %v5129_v2, %v1130_v46  ;;  %v1131_v36 = vmul.f32 %v5113_v33, %v4934_v8 }
 0x459   : > { %v1189_v30 = vpack.c.bf16 %v1164_v25, %v1163_v19  ;;  %v1132_v39 = vmul.f32 %v5113_v33, %v4937_v9  ;;  %v1133_v31 = vmul.f32 %v5113_v33, %v4955_v17  ;;  %v1134_v32 = vmul.f32 %v5113_v33, %v4963_v21 }
 0x45a   : > { %v1190_v34 = vpack.c.bf16 %v1166_v13, %v1165_v26  ;;  %v1191_v35 = vpack.c.bf16 %v1168_v27, %v1167_v12  ;;  %v1169_v40 = vadd.f32 %v5129_v2, %v1131_v36  ;;  %v1135_v41 = vmul.f32 %v5113_v33, %v4978_v28 }
 0x45b   : > { %v1170_v44 = vadd.f32 %v5129_v2, %v1132_v39  ;;  %v1171_v8 = vadd.f32 %v5129_v2, %v1133_v31  ;;  %v1172_v45 = vadd.f32 %v5129_v2, %v1134_v32  ;;  %v1136_v9 = vmul.f32 %v5113_v33, %v4981_v29 }
 0x45c   : > { %v1173_v17 = vadd.f32 %v5129_v2, %v1135_v41  ;;  %v1137_v21 = vmul.f32 %v5113_v33, %v5004_v42  ;;  %v1138_v46 = vmul.f32 %v5113_v33, %v5007_v43  ;;  %v1139_v28 = vmul.f32 %v5113_v33, %v5026_v53 }
 0x45d   : > { %v1192_v47 = vpack.c.bf16 %v1170_v44, %v1169_v40  ;;  %v1193_v4 = vpack.c.bf16 %v1172_v45, %v1171_v8  ;;  %v1174_v14 = vadd.f32 %v5129_v2, %v1136_v9  ;;  %v1140_v15 = vmul.f32 %v5113_v33, %v5029_v54 }
 0x45e   : > { %3287 = vmatmul.mubr.bf16.gmra.mrb[12].mxu0 %v1186_v61  ;;  %3335 = vmatmul.mubr.bf16.gmra.mrb[12].mxu1 %v1186_v61  ;;  %v1175_v29 = vadd.f32 %v5129_v2, %v1137_v21  ;;  %v1176_v0 = vadd.f32 %v5129_v2, %v1138_v46  ;;  %v1177_v42 = vadd.f32 %v5129_v2, %v1139_v28 }
 0x45f   : > { %3290 = vmatprep.mubr.bf16.mxu0 %v1187_v6  ;;  %3338 = vmatprep.mubr.bf16.mxu1 %v1187_v6  ;;  %v1194_v43 = vpack.c.bf16 %v1174_v14, %v1173_v17  ;;  %v1178_v53 = vadd.f32 %v5129_v2, %v1140_v15  ;;  %v1141_v1 = vmul.f32 %v5113_v33, %v5046_v62 }
 0x460   : > { %v1195_v22 = vpack.c.bf16 %v1176_v0, %v1175_v29  ;;  %v1142_v54 = vmul.f32 %v5113_v33, %v5049_v63  ;;  %v1143_v49 = vmul.f32 %v5113_v33, %v5070_v20  ;;  %v1144_v23 = vmul.f32 %v5113_v33, %v5073_v24  ;;  %v5213_v20 = vld [vmem:[#allocation18] ss:$0 sm:$0xff]  ;;  %v5215_v33 = vld [vmem:[#allocation21] ss:$0 sm:$0xff] }
 0x461   : > { %v1196_v51 = vpack.c.bf16 %v1178_v53, %v1177_v42  ;;  %v1179_v37 = vadd.f32 %v5129_v2, %v1141_v1 }
 0x462   : > { %v1180_v38 = vadd.f32 %v5129_v2, %v1142_v54  ;;  %v1181_v52 = vadd.f32 %v5129_v2, %v1143_v49  ;;  %v1182_v48 = vadd.f32 %v5129_v2, %v1144_v23 }
 0x464   : > { %v1197_v62 = vpack.c.bf16 %v1180_v38, %v1179_v37  ;;  %v1198_v50 = vpack.c.bf16 %v1182_v48, %v1181_v52 }
 0x466   : > { %3291 = vmatmul.mubr.bf16.gmra.mrb[16].mxu0 %v1188_v10  ;;  %3339 = vmatmul.mubr.bf16.gmra.mrb[16].mxu1 %v1188_v10 }
 0x467   : > { %3294 = vmatprep.mubr.bf16.mxu0 %v1189_v30  ;;  %3342 = vmatprep.mubr.bf16.mxu1 %v1189_v30 }
 0x46e   : > { %3295 = vmatmul.mubr.bf16.gmra.mrb[20].mxu0 %v1190_v34  ;;  %3343 = vmatmul.mubr.bf16.gmra.mrb[20].mxu1 %v1190_v34 }
 0x46f   : > { %3298 = vmatprep.mubr.bf16.mxu0 %v1191_v35  ;;  %3346 = vmatprep.mubr.bf16.mxu1 %v1191_v35 }
 0x476   : > { %3299 = vmatmul.mubr.bf16.gmra.mrb[24].mxu0 %v1192_v47  ;;  %3347 = vmatmul.mubr.bf16.gmra.mrb[24].mxu1 %v1192_v47 }
 0x477   : > { %3302 = vmatprep.mubr.bf16.mxu0 %v1193_v4  ;;  %3350 = vmatprep.mubr.bf16.mxu1 %v1193_v4 }
 0x47e   : > { %3303 = vmatmul.mubr.bf16.gmra.mrb[28].mxu0 %v1194_v43  ;;  %3351 = vmatmul.mubr.bf16.gmra.mrb[28].mxu1 %v1194_v43 }
 0x47f   : > { %3306 = vmatprep.mubr.bf16.mxu0 %v1195_v22  ;;  %3354 = vmatprep.mubr.bf16.mxu1 %v1195_v22 }
 0x486   : > { %3307 = vmatmul.mubr.bf16.gmra.mrb[32].mxu0 %v1196_v51  ;;  %3355 = vmatmul.mubr.bf16.gmra.mrb[32].mxu1 %v1196_v51 }
 0x487   : > { %3310 = vmatprep.mubr.bf16.mxu0 %v1197_v62  ;;  %3358 = vmatprep.mubr.bf16.mxu1 %v1197_v62 }
 0x48e   : > { %3311 = vmatmul.mubr.bf16.gmra.mrb[36].mxu0 %v1198_v50  ;;  %3359 = vmatmul.mubr.bf16.gmra.mrb[36].mxu1 %v1198_v50 }
 0x529   : > { %v3284_v63 = vpop.f32.mrb[8].mxu0  ;;  %v3332_v24 = vpop.f32.mrb[8].mxu1 }
 0x52a   : > { %v1304_v2 = vpop.f32.mrb[9].mxu0  ;;  %v1568_v55 = vpop.f32.mrb[9].mxu1  ;;  %v1313_v58 = vadd.f32 %v3284_v63, %v5213_v20  ;;  %v1577_v59 = vadd.f32 %v3332_v24, %v5215_v33 }
 0x52b   : > { %v3285_v57 = vpop.f32.mrb[10].mxu0  ;;  %v3333_v56 = vpop.f32.mrb[10].mxu1  ;;  %v1305_v6 = vadd.f32 %v5213_v20, %v1304_v2  ;;  %v1569_v7 = vadd.f32 %v5215_v33, %v1568_v55 }
 0x52c   : > { %v1316_v60 = vadd.f32 %v3285_v57, %v5213_v20  ;;  %v1580_v61 = vadd.f32 %v3333_v56, %v5215_v33  ;;  %v1307_v3 = vpop.f32.mrb[11].mxu0  ;;  %v1571_v5 = vpop.f32.mrb[11].mxu1 }
 0x52d   : > { %v1308_v11 = vadd.f32 %v5213_v20, %v1307_v3  ;;  %v1572_v10 = vadd.f32 %v5215_v33, %v1571_v5 }
 0x52e   : > { %v1432_v16 = vpack.c.bf16 %v1316_v60, %v1313_v58  ;;  %v1696_v18 = vpack.c.bf16 %v1580_v61, %v1577_v59 }
 0x52f   : > { %v1431_v19 = vpack.c.bf16 %v1308_v11, %v1305_v6  ;;  %v1695_v25 = vpack.c.bf16 %v1572_v10, %v1569_v7 }
 0x530   : > { %1448 = vst [vmem:[#allocation4 + $0x8] sm:$0xff] %v1432_v16  ;;  %1712 = vst [vmem:[#allocation5 + $0x8] sm:$0xff] %v1696_v18 }
 0x531   : > { %1447 = vst [vmem:[#allocation4] sm:$0xff] %v1431_v19  ;;  %1711 = vst [vmem:[#allocation5] sm:$0xff] %v1695_v25  ;;  %v3288_v12 = vpop.f32.mrb[12].mxu0  ;;  %v3336_v26 = vpop.f32.mrb[12].mxu1 }
 0x532   : > { %v1320_v13 = vpop.f32.mrb[13].mxu0  ;;  %v1584_v27 = vpop.f32.mrb[13].mxu1  ;;  %v1329_v39 = vadd.f32 %v3288_v12, %v5213_v20  ;;  %v1593_v31 = vadd.f32 %v3336_v26, %v5215_v33 }
 0x533   : > { %v3289_v36 = vpop.f32.mrb[14].mxu0  ;;  %v3337_v30 = vpop.f32.mrb[14].mxu1  ;;  %v1321_v41 = vadd.f32 %v5213_v20, %v1320_v13  ;;  %v1585_v44 = vadd.f32 %v5215_v33, %v1584_v27 }
 0x534   : > { %v1332_v32 = vadd.f32 %v3289_v36, %v5213_v20  ;;  %v1596_v34 = vadd.f32 %v3337_v30, %v5215_v33  ;;  %v1323_v35 = vpop.f32.mrb[15].mxu0  ;;  %v1587_v40 = vpop.f32.mrb[15].mxu1 }
 0x535   : > { %v1324_v8 = vadd.f32 %v5213_v20, %v1323_v35  ;;  %v1588_v45 = vadd.f32 %v5215_v33, %v1587_v40 }
 0x536   : > { %v1434_v9 = vpack.c.bf16 %v1332_v32, %v1329_v39  ;;  %v1698_v17 = vpack.c.bf16 %v1596_v34, %v1593_v31 }
 0x537   : > { %v1433_v21 = vpack.c.bf16 %v1324_v8, %v1321_v41  ;;  %v1697_v46 = vpack.c.bf16 %v1588_v45, %v1585_v44 }
 0x538   : > { %1450 = vst [vmem:[#allocation4 + $0x18] sm:$0xff] %v1434_v9  ;;  %1714 = vst [vmem:[#allocation5 + $0x18] sm:$0xff] %v1698_v17 }
 0x539   : > { %1449 = vst [vmem:[#allocation4 + $0x10] sm:$0xff] %v1433_v21  ;;  %1713 = vst [vmem:[#allocation5 + $0x10] sm:$0xff] %v1697_v46  ;;  %v3292_v28 = vpop.f32.mrb[16].mxu0  ;;  %v3340_v47 = vpop.f32.mrb[16].mxu1 }
 0x53a   : > { %v1336_v4 = vpop.f32.mrb[17].mxu0  ;;  %v1600_v14 = vpop.f32.mrb[17].mxu1  ;;  %v1345_v0 = vadd.f32 %v3292_v28, %v5213_v20  ;;  %v1609_v42 = vadd.f32 %v3340_v47, %v5215_v33 }
 0x53b   : > { %v3293_v15 = vpop.f32.mrb[18].mxu0  ;;  %v3341_v29 = vpop.f32.mrb[18].mxu1  ;;  %v1337_v54 = vadd.f32 %v5213_v20, %v1336_v4  ;;  %v1601_v49 = vadd.f32 %v5215_v33, %v1600_v14 }
 0x53c   : > { %v1348_v43 = vadd.f32 %v3293_v15, %v5213_v20  ;;  %v1612_v53 = vadd.f32 %v3341_v29, %v5215_v33  ;;  %v1339_v1 = vpop.f32.mrb[19].mxu0  ;;  %v1603_v22 = vpop.f32.mrb[19].mxu1 }
 0x53d   : > { %v1340_v23 = vadd.f32 %v5213_v20, %v1339_v1  ;;  %v1604_v51 = vadd.f32 %v5215_v33, %v1603_v22 }
 0x53e   : > { %v1436_v37 = vpack.c.bf16 %v1348_v43, %v1345_v0  ;;  %v1700_v38 = vpack.c.bf16 %v1612_v53, %v1609_v42 }
 0x53f   : > { %v1435_v52 = vpack.c.bf16 %v1340_v23, %v1337_v54  ;;  %v1699_v48 = vpack.c.bf16 %v1604_v51, %v1601_v49 }
 0x540   : > { %1452 = vst [vmem:[#allocation4 + $0x28] sm:$0xff] %v1436_v37  ;;  %1716 = vst [vmem:[#allocation5 + $0x28] sm:$0xff] %v1700_v38 }
 0x541   : > { %1451 = vst [vmem:[#allocation4 + $0x20] sm:$0xff] %v1435_v52  ;;  %1715 = vst [vmem:[#allocation5 + $0x20] sm:$0xff] %v1699_v48  ;;  %v3296_v62 = vpop.f32.mrb[20].mxu0  ;;  %v3344_v50 = vpop.f32.mrb[20].mxu1 }
 0x542   : > { %v1352_v63 = vpop.f32.mrb[21].mxu0  ;;  %v1616_v24 = vpop.f32.mrb[21].mxu1  ;;  %v1361_v57 = vadd.f32 %v3296_v62, %v5213_v20  ;;  %v1625_v56 = vadd.f32 %v3344_v50, %v5215_v33 }
 0x543   : > { %v3297_v2 = vpop.f32.mrb[22].mxu0  ;;  %v3345_v55 = vpop.f32.mrb[22].mxu1  ;;  %v1353_v3 = vadd.f32 %v5213_v20, %v1352_v63  ;;  %v1617_v5 = vadd.f32 %v5215_v33, %v1616_v24 }
 0x544   : > { %v1364_v58 = vadd.f32 %v3297_v2, %v5213_v20  ;;  %v1628_v59 = vadd.f32 %v3345_v55, %v5215_v33  ;;  %v1355_v60 = vpop.f32.mrb[23].mxu0  ;;  %v1619_v61 = vpop.f32.mrb[23].mxu1 }
 0x545   : > { %v1356_v6 = vadd.f32 %v5213_v20, %v1355_v60  ;;  %v1620_v7 = vadd.f32 %v5215_v33, %v1619_v61 }
 0x546   : > { %v1438_v11 = vpack.c.bf16 %v1364_v58, %v1361_v57  ;;  %v1702_v10 = vpack.c.bf16 %v1628_v59, %v1625_v56 }
 0x547   : > { %v1437_v16 = vpack.c.bf16 %v1356_v6, %v1353_v3  ;;  %v1701_v18 = vpack.c.bf16 %v1620_v7, %v1617_v5 }
 0x548   : > { %1454 = vst [vmem:[#allocation4 + $0x38] sm:$0xff] %v1438_v11  ;;  %1718 = vst [vmem:[#allocation5 + $0x38] sm:$0xff] %v1702_v10 }
 0x549   : > { %1453 = vst [vmem:[#allocation4 + $0x30] sm:$0xff] %v1437_v16  ;;  %1717 = vst [vmem:[#allocation5 + $0x30] sm:$0xff] %v1701_v18  ;;  %v3300_v19 = vpop.f32.mrb[24].mxu0  ;;  %v3348_v25 = vpop.f32.mrb[24].mxu1 }
 0x54a   : > { %v1368_v12 = vpop.f32.mrb[25].mxu0  ;;  %v1632_v26 = vpop.f32.mrb[25].mxu1  ;;  %v1377_v36 = vadd.f32 %v3300_v19, %v5213_v20  ;;  %v1641_v30 = vadd.f32 %v3348_v25, %v5215_v33 }
 0x54b   : > { %v3301_v13 = vpop.f32.mrb[26].mxu0  ;;  %v3349_v27 = vpop.f32.mrb[26].mxu1  ;;  %v1369_v35 = vadd.f32 %v5213_v20, %v1368_v12  ;;  %v1633_v40 = vadd.f32 %v5215_v33, %v1632_v26 }
 0x54c   : > { %v1380_v39 = vadd.f32 %v3301_v13, %v5213_v20  ;;  %v1644_v31 = vadd.f32 %v3349_v27, %v5215_v33  ;;  %v1371_v32 = vpop.f32.mrb[27].mxu0  ;;  %v1635_v34 = vpop.f32.mrb[27].mxu1 }
 0x54d   : > { %v1372_v41 = vadd.f32 %v5213_v20, %v1371_v32  ;;  %v1636_v44 = vadd.f32 %v5215_v33, %v1635_v34 }
 0x54e   : > { %v1440_v8 = vpack.c.bf16 %v1380_v39, %v1377_v36  ;;  %v1704_v45 = vpack.c.bf16 %v1644_v31, %v1641_v30 }
 0x54f   : > { %v1439_v9 = vpack.c.bf16 %v1372_v41, %v1369_v35  ;;  %v1703_v17 = vpack.c.bf16 %v1636_v44, %v1633_v40 }
 0x550   : > { %1456 = vst [vmem:[#allocation4 + $0x48] sm:$0xff] %v1440_v8  ;;  %1720 = vst [vmem:[#allocation5 + $0x48] sm:$0xff] %v1704_v45 }
 0x551   : > { %1455 = vst [vmem:[#allocation4 + $0x40] sm:$0xff] %v1439_v9  ;;  %1719 = vst [vmem:[#allocation5 + $0x40] sm:$0xff] %v1703_v17  ;;  %v3304_v21 = vpop.f32.mrb[28].mxu0  ;;  %v3352_v46 = vpop.f32.mrb[28].mxu1 }
 0x552   : > { %v1384_v28 = vpop.f32.mrb[29].mxu0  ;;  %v1648_v47 = vpop.f32.mrb[29].mxu1  ;;  %v1393_v15 = vadd.f32 %v3304_v21, %v5213_v20  ;;  %v1657_v29 = vadd.f32 %v3352_v46, %v5215_v33 }
 0x553   : > { %v3305_v4 = vpop.f32.mrb[30].mxu0  ;;  %v3353_v14 = vpop.f32.mrb[30].mxu1  ;;  %v1385_v1 = vadd.f32 %v5213_v20, %v1384_v28  ;;  %v1649_v22 = vadd.f32 %v5215_v33, %v1648_v47 }
 0x554   : > { %v1396_v0 = vadd.f32 %v3305_v4, %v5213_v20  ;;  %v1660_v42 = vadd.f32 %v3353_v14, %v5215_v33  ;;  %v1387_v43 = vpop.f32.mrb[31].mxu0  ;;  %v1651_v53 = vpop.f32.mrb[31].mxu1 }
 0x555   : > { %v1388_v54 = vadd.f32 %v5213_v20, %v1387_v43  ;;  %v1652_v49 = vadd.f32 %v5215_v33, %v1651_v53 }
 0x556   : > { %v1442_v23 = vpack.c.bf16 %v1396_v0, %v1393_v15  ;;  %v1706_v51 = vpack.c.bf16 %v1660_v42, %v1657_v29 }
 0x557   : > { %v1441_v37 = vpack.c.bf16 %v1388_v54, %v1385_v1  ;;  %v1705_v38 = vpack.c.bf16 %v1652_v49, %v1649_v22 }
 0x558   : > { %1458 = vst [vmem:[#allocation4 + $0x58] sm:$0xff] %v1442_v23  ;;  %1722 = vst [vmem:[#allocation5 + $0x58] sm:$0xff] %v1706_v51 }
 0x559   : > { %1457 = vst [vmem:[#allocation4 + $0x50] sm:$0xff] %v1441_v37  ;;  %1721 = vst [vmem:[#allocation5 + $0x50] sm:$0xff] %v1705_v38  ;;  %v3308_v52 = vpop.f32.mrb[32].mxu0  ;;  %v3356_v48 = vpop.f32.mrb[32].mxu1 }
 0x55a   : > { %v1400_v62 = vpop.f32.mrb[33].mxu0  ;;  %v1664_v50 = vpop.f32.mrb[33].mxu1  ;;  %v1409_v2 = vadd.f32 %v3308_v52, %v5213_v20  ;;  %v1673_v55 = vadd.f32 %v3356_v48, %v5215_v33 }
 0x55b   : > { %v3309_v63 = vpop.f32.mrb[34].mxu0  ;;  %v3357_v24 = vpop.f32.mrb[34].mxu1  ;;  %v1401_v60 = vadd.f32 %v5213_v20, %v1400_v62  ;;  %v1665_v61 = vadd.f32 %v5215_v33, %v1664_v50 }
 0x55c   : > { %v1412_v57 = vadd.f32 %v3309_v63, %v5213_v20  ;;  %v1676_v56 = vadd.f32 %v3357_v24, %v5215_v33  ;;  %v1403_v58 = vpop.f32.mrb[35].mxu0  ;;  %v1667_v59 = vpop.f32.mrb[35].mxu1 }
 0x55d   : > { %v1404_v3 = vadd.f32 %v5213_v20, %v1403_v58  ;;  %v1668_v5 = vadd.f32 %v5215_v33, %v1667_v59 }
 0x55e   : > { %v1444_v6 = vpack.c.bf16 %v1412_v57, %v1409_v2  ;;  %v1708_v7 = vpack.c.bf16 %v1676_v56, %v1673_v55 }
 0x55f   : > { %v1443_v11 = vpack.c.bf16 %v1404_v3, %v1401_v60  ;;  %v1707_v10 = vpack.c.bf16 %v1668_v5, %v1665_v61 }
 0x560   : > { %1460 = vst [vmem:[#allocation4 + $0x68] sm:$0xff] %v1444_v6  ;;  %1724 = vst [vmem:[#allocation5 + $0x68] sm:$0xff] %v1708_v7 }
 0x561   : > { %1459 = vst [vmem:[#allocation4 + $0x60] sm:$0xff] %v1443_v11  ;;  %1723 = vst [vmem:[#allocation5 + $0x60] sm:$0xff] %v1707_v10  ;;  %v3312_v16 = vpop.f32.mrb[36].mxu0  ;;  %v3360_v18 = vpop.f32.mrb[36].mxu1 }
 0x562   : > { %v1416_v19 = vpop.f32.mrb[37].mxu0  ;;  %v1680_v25 = vpop.f32.mrb[37].mxu1  ;;  %v1425_v13 = vadd.f32 %v3312_v16, %v5213_v20  ;;  %v1689_v27 = vadd.f32 %v3360_v18, %v5215_v33 }
 0x563   : > { %v3313_v12 = vpop.f32.mrb[38].mxu0  ;;  %v3361_v26 = vpop.f32.mrb[38].mxu1  ;;  %v1417_v32 = vadd.f32 %v5213_v20, %v1416_v19  ;;  %v1681_v34 = vadd.f32 %v5215_v33, %v1680_v25 }
 0x564   : > { %v1428_v36 = vadd.f32 %v3313_v12, %v5213_v20  ;;  %v1692_v30 = vadd.f32 %v3361_v26, %v5215_v33  ;;  %v1419_v39 = vpop.f32.mrb[39].mxu0  ;;  %v1683_v31 = vpop.f32.mrb[39].mxu1 }
 0x565   : > { %v1420_v35 = vadd.f32 %v5213_v20, %v1419_v39  ;;  %v1684_v40 = vadd.f32 %v5215_v33, %v1683_v31 }
 0x566   : > { %v1446_v41 = vpack.c.bf16 %v1428_v36, %v1425_v13  ;;  %v1710_v44 = vpack.c.bf16 %v1692_v30, %v1689_v27 }
 0x567   : > { %v1445_v8 = vpack.c.bf16 %v1420_v35, %v1417_v32  ;;  %v1709_v45 = vpack.c.bf16 %v1684_v40, %v1681_v34 }
 0x568   : > { %1462 = vst [vmem:[#allocation4 + $0x78] sm:$0xff] %v1446_v41  ;;  %1726 = vst [vmem:[#allocation5 + $0x78] sm:$0xff] %v1710_v44 }
 0x569   : > { %1461 = vst [vmem:[#allocation4 + $0x70] sm:$0xff] %v1445_v8  ;;  %1725 = vst [vmem:[#allocation5 + $0x70] sm:$0xff] %v1709_v45 }
 0x56a PF: > { %v3771_v9 = vld [vmem:[#allocation14] sm:$0xff]   ;;  %s5662_s4 = sld [smem:[#allocation38_spill]]  ;;  %v3772_v17 = vld [vmem:[#allocation14 + $0x8] sm:$0xff]   ;;  %v3773_v20 = vld [vmem:[#allocation14 + $0x10] sm:$0xff]   ;;  %s5663_s5 = sld [smem:[#allocation39_spill]] }
 0x56b   : > { %3362 = vmatprep.subr.bf16.mxu0 %v3771_v9  ;;  %v3774_v33 = vld [vmem:[#allocation14 + $0x18] sm:$0xff]   ;;  %v3775_v0 = vld [vmem:[#allocation14 + $0x20] sm:$0xff]   ;;  %v3776_v1 = vld [vmem:[#allocation14 + $0x28] sm:$0xff]   ;;  %s2681_s16 = sshll.u32 %s4910_s24, 4  ;;  %p5666_p5 = scmp.ne.s32.totalorder %s5650_s17, 0  ;;  %s5519_s16 = int_to_ptr.vmem [resolvable:$true] %s2681_s16 }
 0x56c   : > { %3363 = vmatpush3.bf16.msra.mxu0 %v3771_v9  ;;  %v5287_v28 = vld [vmem:[#allocation2] ss:$0 sm:$0xff]  ;;  %v5291_v14 = vld [vmem:[#allocation3] ss:$0 sm:$0xff]  ;;  %v1983_v43 = vld [vmem:[#allocation4 + $0x40] sm:$0xff] }
 0x56d   : > { %3364 = vmatprep.subr.bf16.mxu0 %v3772_v17  ;;  %v1975_v53 = vld [vmem:[#allocation4] sm:$0xff]  ;;  %v1984_v22 = vld [vmem:[#allocation4 + $0x48] sm:$0xff]  ;;  %3110 = vmatprep.subr.bf16.mxu1 %v1983_v43  ;;  %v3777_v23 = vld [vmem:[#allocation14 + $0x30] sm:$0xff]  }
 0x56e   : > { %3111 = vmatpush3.bf16.xpose.msra.mxu1 %v1975_v53  ;;  %v1976_v38 = vld [vmem:[#allocation4 + $0x8] sm:$0xff]  ;;  %v3778_v63 = vld [vmem:[#allocation14 + $0x38] sm:$0xff]   ;;  %v1985_v24 = vld [vmem:[#allocation4 + $0x50] sm:$0xff] }
 0x56f   : > { %3112 = vmatprep.subr.bf16.mxu1 %v1984_v22  ;;  %v1977_v16 = vld [vmem:[#allocation4 + $0x10] sm:$0xff]  ;;  %v1986_v18 = vld [vmem:[#allocation4 + $0x58] sm:$0xff]  ;;  %v1987_v44 = vld [vmem:[#allocation4 + $0x60] sm:$0xff] }
 0x570   : > { %s2928_s6 = sshll.u32 %s5662_s4, 7  ;;  %3365 = vmatpush3.bf16.msra.mxu0 %v3772_v17  ;;  %v1978_v41 = vld [vmem:[#allocation4 + $0x18] sm:$0xff]  ;;  %v1980_v53 = vld [vmem:[#allocation4 + $0x28] sm:$0xff]  ;;  %v1981_v22 = vld [vmem:[#allocation4 + $0x30] sm:$0xff]  ;;  %s2950_s2 = sshll.u32 %s5662_s4, 4 }
 0x571   : > { %s5283_s21 = scalar_lea.vmem %s4877_s27, %s2928_s6 [#allocation6]  ;;  %3366 = vmatprep.subr.bf16.mxu0 %v3773_v20  ;;  %s2951_s12 = sshll.u32 %s5663_s5, 5 }
 0x572   : > { %v1729_v21 = vld [vmem:[%s5283_s21] sm:$0xff]  ;;  %v1730_v46 = vld [vmem:[%s5283_s21 + $0x8] sm:$0xff]  ;;  %v1731_v54 = vld [vmem:[%s5283_s21 + $0x10] sm:$0xff]  ;;  %s2678_s1 = sadd.s32 %s2951_s12, %s2950_s2  ;;  %s5665_s4 = sld [smem:[#allocation49_spill]] }
 0x573   : > { %v1752_v47 = vmul.f32 %v5287_v28, %v1729_v21  ;;  %v1753_v4 = vmul.f32 %v5287_v28, %v1730_v46  ;;  %v1732_v49 = vld [vmem:[%s5283_s21 + $0x18] sm:$0xff]  ;;  %v1733_v51 = vld [vmem:[%s5283_s21 + $0x20] sm:$0xff]  ;;  %v1734_v37 = vld [vmem:[%s5283_s21 + $0x28] sm:$0xff]  ;;  %v1754_v52 = vmul.f32 %v5287_v28, %v1731_v54  ;;  %s2952_s27 = sshll.u32 %s2678_s1, 7  ;;  %s5527_s5 = scalar_lea.sflag [#allocation8], %s591_s28 }
 0x574   : > { %3367 = vmatpush3.bf16.msra.mxu0 %v3773_v20  ;;  %v1755_v48 = vmul.f32 %v5287_v28, %v1732_v49  ;;  %v1756_v62 = vmul.f32 %v5287_v28, %v1733_v51  ;;  %v1757_v50 = vmul.f32 %v5287_v28, %v1734_v37  ;;  %v1735_v58 = vld [vmem:[%s5283_s21 + $0x30] sm:$0xff]  ;;  %v1736_v59 = vld [vmem:[%s5283_s21 + $0x38] sm:$0xff]  ;;  %v1737_v60 = vld [vmem:[%s5283_s21 + $0x40] sm:$0xff]  ;;  %s4237_s2 = scalar_lea.vmem %s5519_s16, 2048  ;;  %s4405_s12 = smov [#allocation26]  }
 0x575   : > { %v1775_v15 = vadd.f32 %v5291_v14, %v1752_v47  ;;  %v1776_v29 = vadd.f32 %v5291_v14, %v1753_v4  ;;  %3368 = vmatprep.subr.bf16.mxu0 %v3774_v33  ;;  %v1777_v2 = vadd.f32 %v5291_v14, %v1754_v52  ;;  %v1738_v61 = vld [vmem:[%s5283_s21 + $0x48] sm:$0xff]  ;;  %v1758_v5 = vmul.f32 %v5287_v28, %v1735_v58  ;;  %v1739_v13 = vld [vmem:[%s5283_s21 + $0x50] sm:$0xff]  ;;  %v1740_v27 = vld [vmem:[%s5283_s21 + $0x58] sm:$0xff]  ;;  %p4238_p8 = scmp.ne.s32.totalorder %s5519_s16, %s4237_s2  ;;  %s4241_s1 = sshll.u32 %s4405_s12, 4  ;;  %s4242_s1 = int_to_ptr.vmem [resolvable:$false] %s4241_s1 }
 0x576   : > { %v1778_v55 = vadd.f32 %v5291_v14, %v1755_v48  ;;  %3113 = vmatpush3.bf16.xpose.msra.mxu1 %v1976_v38  ;;  %v1779_v57 = vadd.f32 %v5291_v14, %v1756_v62  ;;  %v1780_v56 = vadd.f32 %v5291_v14, %v1757_v50  ;;  %v1759_v6 = vmul.f32 %v5287_v28, %v1736_v59  ;;  %v1741_v36 = vld [vmem:[%s5283_s21 + $0x60] sm:$0xff]  ;;  %v1742_v30 = vld [vmem:[%s5283_s21 + $0x68] sm:$0xff]  ;;  %v1743_v20 = vld [vmem:[%s5283_s21 + $0x70] sm:$0xff]  ;;  %p4244_p7 = scmp.lt.s32.totalorder %s5519_s16, %s4242_s1 }
 0x577   : > { %v1791_v42 = vpack.c.bf16 %v1776_v29, %v1775_v15  ;;  %3114 = vmatprep.subr.bf16.mxu1 %v1985_v24  ;;  %v1760_v11 = vmul.f32 %v5287_v28, %v1737_v60  ;;  %v1761_v10 = vmul.f32 %v5287_v28, %v1738_v61  ;;  %v1781_v19 = vadd.f32 %v5291_v14, %v1758_v5  ;;  %v1979_v15 = vld [vmem:[#allocation4 + $0x20] sm:$0xff]  ;;  %v1988_v29 = vld [vmem:[#allocation4 + $0x68] sm:$0xff]  ;;  %v1982_v54 = vld [vmem:[#allocation4 + $0x38] sm:$0xff]  ;;  %p4239_p12 = pnand %p4238_p8, %p5666_p5 }
 0x578   : > { %3369 = vmatpush3.bf16.msra.mxu0 %v3774_v33  ;;  %v1792_v3 = vpack.c.bf16 %v1778_v55, %v1777_v2  ;;  %v1793_v7 = vpack.c.bf16 %v1780_v56, %v1779_v57  ;;  %v1782_v25 = vadd.f32 %v5291_v14, %v1759_v6  ;;  %v1762_v31 = vmul.f32 %v5287_v28, %v1739_v13  ;;  %v1744_v33 = vld [vmem:[%s5283_s21 + $0x78] sm:$0xff]  ;;  %s5517_s6 = scalar_lea.hbm %s5665_s4, %s2952_s27  ;;  %s4243_s27 = scalar_lea.vmem %s4242_s1, 4096 }
 0x579   : > { %3378 = vmatprep.mubr.bf16.mxu0 %v1791_v42  ;;  %3370 = vmatprep.subr.bf16.mxu0 %v3775_v0  ;;  %v1783_v12 = vadd.f32 %v5291_v14, %v1760_v11  ;;  %v1784_v26 = vadd.f32 %v5291_v14, %v1761_v10  ;;  %v1763_v32 = vmul.f32 %v5287_v28, %v1740_v27  ;;  %p4240_p2 = pneg %p4239_p12  ;;  %p4245_p6 = scmp.lt.s32.totalorder %s4243_s27, %s4237_s2 }
 0x57a   : > { %v1794_v39 = vpack.c.bf16 %v1782_v25, %v1781_v19  ;;  %v1764_v35 = vmul.f32 %v5287_v28, %v1741_v36  ;;  %v1765_v40 = vmul.f32 %v5287_v28, %v1742_v30  ;;  %v1785_v8 = vadd.f32 %v5291_v14, %v1762_v31 }
 0x57b   : > { %v1795_v34 = vpack.c.bf16 %v1784_v26, %v1783_v12  ;;  %v1786_v45 = vadd.f32 %v5291_v14, %v1763_v32  ;;  %v1766_v46 = vmul.f32 %v5287_v28, %v1743_v20  ;;  %v1767_v47 = vmul.f32 %v5287_v28, %v1744_v33  ;;  %v1990_v28 = vld [vmem:[#allocation4 + $0x78] sm:$0xff]  ;;  %p4246_p1 = por %p4245_p6, %p4244_p7 }
 0x57c   : > { %3371 = vmatpush3.bf16.msra.mxu0 %v3775_v0  ;;  %v1787_v9 = vadd.f32 %v5291_v14, %v1764_v35  ;;  %v1788_v17 = vadd.f32 %v5291_v14, %v1765_v40  ;;  %v2320_v40 = vld [vmem:[#allocation5 + $0x40] sm:$0xff] }
 0x57d   : > { %3372 = vmatprep.subr.bf16.mxu0 %v3776_v1  ;;  %v1796_v21 = vpack.c.bf16 %v1786_v45, %v1785_v8  ;;  %v1789_v0 = vadd.f32 %v5291_v14, %v1766_v46  ;;  %v1790_v42 = vadd.f32 %v5291_v14, %v1767_v47  ;;  %v2313_v8 = vld [vmem:[#allocation5 + $0x8] sm:$0xff]  ;;  %v2322_v45 = vld [vmem:[#allocation5 + $0x50] sm:$0xff]  ;;  %p4247_p11 = pnand %p4246_p1, %p4240_p2 }
 0x57e   : > { %3115 = vmatpush3.bf16.xpose.msra.mxu1 %v1977_v16  ;;  %v1797_v4 = vpack.c.bf16 %v1788_v17, %v1787_v9  ;;  %v2314_v9 = vld [vmem:[#allocation5 + $0x10] sm:$0xff] }
 0x57f   : > { %3116 = vmatprep.subr.bf16.mxu1 %v1986_v18  ;;  %v1798_v43 = vpack.c.bf16 %v1790_v42, %v1789_v0 }
 0x580   : > { %3373 = vmatpush3.bf16.msra.mxu0 %v3776_v1  ;;  %v1989_v1 = vld [vmem:[#allocation4 + $0x70] sm:$0xff] }
 0x581   : > { %3374 = vmatprep.subr.bf16.mxu0 %v3777_v23 }
 0x584   : > { %3375 = vmatpush3.bf16.msra.mxu0 %v3777_v23  ;;  %v2931_v23 = vld [vmem:[#allocation15] ss:$0 sm:$0xff] }
 0x585   : > { %3376 = vmatprep.subr.bf16.mxu0 %v3778_v63 }
 0x586   : > { %3117 = vmatpush3.bf16.xpose.msra.mxu1 %v1978_v41  ;;  %v2312_v41 = vld [vmem:[#allocation5] sm:$0xff] }
 0x587   : > { %3118 = vmatprep.subr.bf16.mxu1 %v1987_v44  ;;  %v2321_v44 = vld [vmem:[#allocation5 + $0x48] sm:$0xff] }
 0x588   : > { %3377 = vmatpush3.bf16.msra.mxu0 %v3778_v63 }
 0x589   : > { %3142 = vmatprep.subr.bf16.mxu0 %v2320_v40 }
 0x58b   : > { %3379 = vmatmul.mubr.bf16.vlgmr.msra.gmra.mrb[0].mxu0 %v1792_v3 }
 0x58c   : > { %3382 = vmatprep.mubr.bf16.mxu0 %v1793_v7  ;;  %3143 = vmatpush3.bf16.msra.mxu0 %v2312_v41 }
 0x58d   : > { %3144 = vmatprep.subr.bf16.mxu0 %v2321_v44 }
 0x58e   : > { %3119 = vmatpush3.bf16.xpose.msra.mxu1 %v1979_v15 }
 0x58f   : > { %3120 = vmatprep.subr.bf16.mxu1 %v1988_v29 }
 0x590   : > { %3145 = vmatpush3.bf16.msra.mxu0 %v2313_v8 }
 0x591   : > { %3146 = vmatprep.subr.bf16.mxu0 %v2322_v45 }
 0x593   : > { %3383 = vmatmul.mubr.bf16.gmra.mrb[4].mxu0 %v1794_v39 }
 0x594   : > { %3386 = vmatprep.mubr.bf16.mxu0 %v1795_v34  ;;  %3147 = vmatpush3.bf16.msra.mxu0 %v2314_v9 }
 0x596   : > { %3121 = vmatpush3.bf16.xpose.msra.mxu1 %v1980_v53 }
 0x597   : > { %3122 = vmatprep.subr.bf16.mxu1 %v1989_v1 }
 0x59b   : > { %3387 = vmatmul.mubr.bf16.gmra.mrb[8].mxu0 %v1796_v21 }
 0x59c   : > { %3390 = vmatprep.mubr.bf16.mxu0 %v1797_v4 }
 0x59e   : > { %3123 = vmatpush3.bf16.xpose.msra.mxu1 %v1981_v22 }
 0x59f   : > { %3124 = vmatprep.subr.bf16.mxu1 %v1990_v28 }
 0x5a3   : > { %3391 = vmatmul.mubr.bf16.gmra.mrb[12].mxu0 %v1798_v43 }
 0x5a6   : > { %3125 = vmatpush3.bf16.xpose.msra.mxu1 %v1982_v54 }
 0x5a7   : > { %3514 = vmatprep.subr.bf16.mxu1 %v2320_v40 }
 0x65e   : > { %v3380_v49 = vpop.f32.mrb[0].mxu0 }
 0x65f   : > { %v1904_v51 = vpop.f32.mrb[1].mxu0  ;;  %v1913_v14 = vadd.f32 %v3380_v49, %v2931_v23 }
 0x660   : > { %v3381_v37 = vpop.f32.mrb[2].mxu0  ;;  %v1905_v48 = vadd.f32 %v2931_v23, %v1904_v51  ;;  %v2315_v51 = vld [vmem:[#allocation5 + $0x18] sm:$0xff] }
 0x661   : > { %v1916_v38 = vadd.f32 %v3381_v37, %v2931_v23  ;;  %v1907_v52 = vpop.f32.mrb[3].mxu0 }
 0x662   : > { %v1908_v62 = vadd.f32 %v2931_v23, %v1907_v52  ;;  %v2316_v52 = vld [vmem:[#allocation5 + $0x20] sm:$0xff] }
 0x663   : > { %v1968_v50 = vpack.c.bf16 %v1916_v38, %v1913_v14  ;;  %v2324_v14 = vld [vmem:[#allocation5 + $0x60] sm:$0xff] }
 0x664   : > { %v1967_v63 = vpack.c.bf16 %v1908_v62, %v1905_v48 }
 0x666   : > { %3126 = vmatprep.mubr.bf16.mxu1 %v1967_v63  ;;  %v3384_v24 = vpop.f32.mrb[4].mxu0 }
 0x667   : > { %3127 = vmatmul.mubr.bf16.vlgmr.msra.gmra.mrb[0].mxu1 %v1967_v63  ;;  %v1929_v2 = vadd.f32 %v3384_v24, %v2931_v23  ;;  %v1920_v55 = vpop.f32.mrb[5].mxu0  ;;  %v2325_v24 = vld [vmem:[#allocation5 + $0x68] sm:$0xff] }
 0x668   : > { %3128 = vmatprep.mubr.bf16.mxu1 %v1968_v50  ;;  %v1921_v57 = vadd.f32 %v2931_v23, %v1920_v55  ;;  %v3385_v56 = vpop.f32.mrb[6].mxu0  ;;  %3522 = vmatpush3.bf16.msra.mxu1 %v2312_v41 }
 0x669   : > { %v1932_v58 = vadd.f32 %v3385_v56, %v2931_v23  ;;  %v1923_v59 = vpop.f32.mrb[7].mxu0  ;;  %3515 = vmatprep.subr.bf16.mxu1 %v2321_v44 }
 0x66a   : > { %v1924_v60 = vadd.f32 %v2931_v23, %v1923_v59 }
 0x66b   : > { %v1970_v61 = vpack.c.bf16 %v1932_v58, %v1929_v2  ;;  %v2317_v2 = vld [vmem:[#allocation5 + $0x28] sm:$0xff]  ;;  %v2318_v58 = vld [vmem:[#allocation5 + $0x30] sm:$0xff] }
 0x66c   : > { %v1969_v3 = vpack.c.bf16 %v1924_v60, %v1921_v57  ;;  %3523 = vmatpush3.bf16.msra.mxu1 %v2313_v8  ;;  %v2326_v57 = vld [vmem:[#allocation5 + $0x70] sm:$0xff] }
 0x66d   : > { %3516 = vmatprep.subr.bf16.mxu1 %v2322_v45 }
 0x66e   : > { %v3388_v5 = vpop.f32.mrb[8].mxu0 }
 0x66f   : > { %3129 = vmatmul.mubr.bf16.gmra.mrb[4].mxu1 %v1968_v50  ;;  %v1945_v6 = vadd.f32 %v3388_v5, %v2931_v23  ;;  %v1936_v7 = vpop.f32.mrb[9].mxu0  ;;  %v2327_v5 = vld [vmem:[#allocation5 + $0x78] sm:$0xff] }
 0x670   : > { %3130 = vmatprep.mubr.bf16.mxu1 %v1969_v3  ;;  %v1937_v11 = vadd.f32 %v2931_v23, %v1936_v7  ;;  %v3389_v10 = vpop.f32.mrb[10].mxu0  ;;  %3524 = vmatpush3.bf16.msra.mxu1 %v2314_v9 }
 0x671   : > { %v1948_v16 = vadd.f32 %v3389_v10, %v2931_v23  ;;  %v1939_v18 = vpop.f32.mrb[11].mxu0 }
 0x672   : > { %v1940_v19 = vadd.f32 %v2931_v23, %v1939_v18 }
 0x673   : > { %v1972_v25 = vpack.c.bf16 %v1948_v16, %v1945_v6  ;;  %v2319_v6 = vld [vmem:[#allocation5 + $0x38] sm:$0xff] }
 0x674   : > { %v1971_v12 = vpack.c.bf16 %v1940_v19, %v1937_v11 }
 0x676   : > { %v3392_v26 = vpop.f32.mrb[12].mxu0 }
 0x677   : > { %3131 = vmatmul.mubr.bf16.gmra.mrb[8].mxu1 %v1969_v3  ;;  %v1961_v13 = vadd.f32 %v3392_v26, %v2931_v23  ;;  %v1952_v27 = vpop.f32.mrb[13].mxu0 }
 0x678   : > { %3132 = vmatprep.mubr.bf16.mxu1 %v1970_v61  ;;  %v1953_v36 = vadd.f32 %v2931_v23, %v1952_v27  ;;  %v3393_v30 = vpop.f32.mrb[14].mxu0 }
 0x679   : > { %v1964_v39 = vadd.f32 %v3393_v30, %v2931_v23  ;;  %v1955_v31 = vpop.f32.mrb[15].mxu0 }
 0x67a   : > { %v1956_v32 = vadd.f32 %v2931_v23, %v1955_v31  ;;  %v2323_v23 = vld [vmem:[#allocation5 + $0x58] sm:$0xff] }
 0x67b   : > { %v1974_v34 = vpack.c.bf16 %v1964_v39, %v1961_v13  ;;  %3148 = vmatprep.subr.bf16.mxu0 %v2323_v23  ;;  %3517 = vmatprep.subr.bf16.mxu1 %v2323_v23 }
 0x67c   : > { %v1973_v35 = vpack.c.bf16 %v1956_v32, %v1953_v36  ;;  %3149 = vmatpush3.bf16.msra.mxu0 %v2315_v51  ;;  %3525 = vmatpush3.bf16.msra.mxu1 %v2315_v51 }
 0x67d   : > { %3150 = vmatprep.subr.bf16.mxu0 %v2324_v14  ;;  %3518 = vmatprep.subr.bf16.mxu1 %v2324_v14 }
 0x67f   : > { %3133 = vmatmul.mubr.bf16.gmra.mrb[12].mxu1 %v1970_v61 }
 0x680   : > { %3134 = vmatprep.mubr.bf16.mxu1 %v1971_v12  ;;  %3151 = vmatpush3.bf16.msra.mxu0 %v2316_v52 }
 0x681   : > { %3526 = vmatpush3.bf16.msra.mxu1 %v2316_v52  ;;  %3152 = vmatprep.subr.bf16.mxu0 %v2325_v24 }
 0x682   : > { %3519 = vmatprep.subr.bf16.mxu1 %v2325_v24 }
 0x684   : > { %3153 = vmatpush3.bf16.msra.mxu0 %v2317_v2 }
 0x685   : > { %3527 = vmatpush3.bf16.msra.mxu1 %v2317_v2  ;;  %3154 = vmatprep.subr.bf16.mxu0 %v2326_v57 }
 0x686   : > { %3520 = vmatprep.subr.bf16.mxu1 %v2326_v57 }
 0x687   : > { %3135 = vmatmul.mubr.bf16.gmra.mrb[16].mxu1 %v1971_v12 }
 0x688   : > { %3136 = vmatprep.mubr.bf16.mxu1 %v1972_v25  ;;  %3155 = vmatpush3.bf16.msra.mxu0 %v2318_v58 }
 0x689   : > { %3528 = vmatpush3.bf16.msra.mxu1 %v2318_v58  ;;  %3156 = vmatprep.subr.bf16.mxu0 %v2327_v5 }
 0x68a   : > { %3521 = vmatprep.subr.bf16.mxu1 %v2327_v5 }
 0x68c   : > { %3157 = vmatpush3.bf16.msra.mxu0 %v2319_v6 }
 0x68d   : > { %3529 = vmatpush3.bf16.msra.mxu1 %v2319_v6 }
 0x68f   : > { %3137 = vmatmul.mubr.bf16.gmra.mrb[20].mxu1 %v1972_v25 }
 0x690   : > { %3138 = vmatprep.mubr.bf16.mxu1 %v1973_v35 }
 0x697   : > { %3139 = vmatmul.mubr.bf16.gmra.mrb[24].mxu1 %v1973_v35 }
 0x698   : > { %3140 = vmatprep.mubr.bf16.mxu1 %v1974_v34 }
 0x69f   : > { %3141 = vmatmul.mubr.bf16.gmra.mrb[28].mxu1 %v1974_v34 }
 0x73a   : > { %v5337_v17 = vpop.f32.mrb[0].mxu1 }
 0x73b   : > { %v5339_v20 = vpop.f32.mrb[1].mxu1 }
 0x73c   : > { %v5341_v33 = vpop.f32.mrb[2].mxu1  ;;  %v2104_v21 = vmax.f32 %v5337_v17, %v5339_v20 }
 0x73d   : > { %v5345_v46 = vpop.f32.mrb[3].mxu1 }
 0x73e   : > { %2105 = vmax.xlane.f32.xlu0 %v2104_v21  ;;  %v2107_v47 = vmax.f32 %v5341_v33, %v5345_v46 }
 0x742   : > { %2108 = vmax.xlane.f32.xlu0 %v2107_v47  ;;  %v5349_v4 = vpop.f32.mrb[4].mxu1 }
 0x743   : > { %v5351_v15 = vpop.f32.mrb[5].mxu1 }
 0x744   : > { %v5353_v29 = vpop.f32.mrb[6].mxu1  ;;  %v2110_v0 = vmax.f32 %v5349_v4, %v5351_v15 }
 0x745   : > { %v5357_v42 = vpop.f32.mrb[7].mxu1 }
 0x746   : > { %2111 = vmax.xlane.f32.xlu1 %v2110_v0  ;;  %v2113_v43 = vmax.f32 %v5353_v29, %v5357_v42 }
 0x74a   : > { %2114 = vmax.xlane.f32.xlu1 %v2113_v43  ;;  %v5361_v53 = vpop.f32.mrb[8].mxu1 }
 0x74b   : > { %v5363_v1 = vpop.f32.mrb[9].mxu1 }
 0x74c   : > { %v5365_v22 = vpop.f32.mrb[10].mxu1  ;;  %v2116_v28 = vmax.f32 %v5361_v53, %v5363_v1 }
 0x74d   : > { %v5369_v54 = vpop.f32.mrb[11].mxu1 }
 0x74e   : > { %2117 = vmax.xlane.f32.xlu0 %v2116_v28  ;;  %v2119_v49 = vmax.f32 %v5365_v22, %v5369_v54 }
 0x750   : > { %2120 = vmax.xlane.f32.xlu1 %v2119_v49 }
 0x752   : > { %v5373_v37 = vpop.f32.mrb[12].mxu1 }
 0x753   : > { %v5375_v38 = vpop.f32.mrb[13].mxu1 }
 0x754   : > { %v5377_v48 = vpop.f32.mrb[14].mxu1  ;;  %v2122_v62 = vmax.f32 %v5373_v37, %v5375_v38 }
 0x755   : > { %v5381_v50 = vpop.f32.mrb[15].mxu1 }
 0x756   : > { %2123 = vmax.xlane.f32.xlu0 %v2122_v62  ;;  %v2125_v63 = vmax.f32 %v5377_v48, %v5381_v50 }
 0x758   : > { %2126 = vmax.xlane.f32.xlu1 %v2125_v63 }
 0x75a   : > { %v5385_v55 = vpop.f32.mrb[16].mxu1 }
 0x75b   : > { %v5387_v56 = vpop.f32.mrb[17].mxu1 }
 0x75c   : > { %v5389_v59 = vpop.f32.mrb[18].mxu1  ;;  %v2128_v60 = vmax.f32 %v5385_v55, %v5387_v56 }
 0x75d   : > { %v5393_v61 = vpop.f32.mrb[19].mxu1 }
 0x75e   : > { %2129 = vmax.xlane.f32.xlu0 %v2128_v60  ;;  %v2131_v3 = vmax.f32 %v5389_v59, %v5393_v61 }
 0x760   : > { %2132 = vmax.xlane.f32.xlu1 %v2131_v3 }
 0x762   : > { %v5397_v7 = vpop.f32.mrb[20].mxu1 }
 0x763   : > { %v5399_v11 = vpop.f32.mrb[21].mxu1 }
 0x764   : > { %v5401_v10 = vpop.f32.mrb[22].mxu1  ;;  %v2134_v16 = vmax.f32 %v5397_v7, %v5399_v11 }
 0x765   : > { %v5405_v18 = vpop.f32.mrb[23].mxu1 }
 0x766   : > { %2135 = vmax.xlane.f32.xlu0 %v2134_v16  ;;  %v2137_v19 = vmax.f32 %v5401_v10, %v5405_v18 }
 0x768   : > { %2138 = vmax.xlane.f32.xlu1 %v2137_v19 }
 0x76a   : > { %v5409_v25 = vpop.f32.mrb[24].mxu1 }
 0x76b   : > { %v5411_v12 = vpop.f32.mrb[25].mxu1 }
 0x76c   : > { %v5413_v26 = vpop.f32.mrb[26].mxu1  ;;  %v2140_v13 = vmax.f32 %v5409_v25, %v5411_v12 }
 0x76d   : > { %v5417_v27 = vpop.f32.mrb[27].mxu1 }
 0x76e   : > { %2141 = vmax.xlane.f32.xlu0 %v2140_v13  ;;  %v2143_v36 = vmax.f32 %v5413_v26, %v5417_v27 }
 0x770   : > { %2144 = vmax.xlane.f32.xlu1 %v2143_v36 }
 0x772   : > { %v5421_v30 = vpop.f32.mrb[28].mxu1 }
 0x773   : > { %v5423_v39 = vpop.f32.mrb[29].mxu1 }
 0x774   : > { %v5425_v31 = vpop.f32.mrb[30].mxu1  ;;  %v2146_v32 = vmax.f32 %v5421_v30, %v5423_v39 }
 0x775   : > { %v5429_v34 = vpop.f32.mrb[31].mxu1 }
 0x776   : > { %2147 = vmax.xlane.f32.xlu0 %v2146_v32  ;;  %v2149_v35 = vmax.f32 %v5425_v31, %v5429_v34 }
 0x778   : > { %2150 = vmax.xlane.f32.xlu1 %v2149_v35 }
 0x7cb   : > { %v2106_v40 = vpop.xlane.xlu0 %2105 }
 0x7cc   : > { %v2152_v41 = vsub.f32 %v5337_v17, %v2106_v40  ;;  %v2153_v44 = vsub.f32 %v5339_v20, %v2106_v40 }
 0x7ce   : > { %v2184_v8 = vmul.f32 1.442695, %v2152_v41  ;;  %v2186_v45 = vmul.f32 1.442695, %v2153_v44 }
 0x7cf   : > { %v2109_v9 = vpop.xlane.xlu0 %2108 }
 0x7d0   : > { %3787 = vpow2.f32 %v2184_v8  ;;  %v2154_v21 = vsub.f32 %v5341_v33, %v2109_v9  ;;  %v2155_v47 = vsub.f32 %v5345_v46, %v2109_v9 }
 0x7d1   : > { %3789 = vpow2.f32 %v2186_v45 }
 0x7d2   : > { %v2188_v0 = vmul.f32 1.442695, %v2154_v21  ;;  %v2190_v43 = vmul.f32 1.442695, %v2155_v47 }
 0x7d3   : > { %v2112_v28 = vpop.xlane.xlu1 %2111 }
 0x7d4   : > { %3791 = vpow2.f32 %v2188_v0  ;;  %v2156_v49 = vsub.f32 %v5349_v4, %v2112_v28  ;;  %v2157_v23 = vsub.f32 %v5351_v15, %v2112_v28 }
 0x7d5   : > { %3793 = vpow2.f32 %v2190_v43 }
 0x7d6   : > { %v2192_v17 = vmul.f32 1.442695, %v2156_v49  ;;  %v2194_v20 = vmul.f32 1.442695, %v2157_v23 }
 0x7d7   : > { %v2115_v51 = vpop.xlane.xlu1 %2114 }
 0x7d8   : > { %3795 = vpow2.f32 %v2192_v17  ;;  %v2158_v14 = vsub.f32 %v5353_v29, %v2115_v51  ;;  %v2159_v33 = vsub.f32 %v5357_v42, %v2115_v51 }
 0x7d9   : > { %3797 = vpow2.f32 %v2194_v20 }
 0x7da   : > { %v3788_v46 = vpop.eup %3787  ;;  %v2196_v52 = vmul.f32 1.442695, %v2158_v14  ;;  %v2198_v62 = vmul.f32 1.442695, %v2159_v33 }
 0x7db   : > { %v3790_v63 = vpop.eup %3789  ;;  %v2118_v24 = vpop.xlane.xlu0 %2117 }
 0x7dc   : > { %3799 = vpow2.f32 %v2196_v52  ;;  %v2160_v4 = vsub.f32 %v5361_v53, %v2118_v24  ;;  %v2161_v15 = vsub.f32 %v5363_v1, %v2118_v24  ;;  %v2248_v2 = vadd.f32 %v3790_v63, %v3788_v46 }
 0x7dd   : > { %3801 = vpow2.f32 %v2198_v62  ;;  %v2121_v57 = vpop.xlane.xlu1 %2120 }
 0x7de   : > { %v3792_v58 = vpop.eup %3791  ;;  %v2200_v60 = vmul.f32 1.442695, %v2160_v4  ;;  %v2202_v3 = vmul.f32 1.442695, %v2161_v15  ;;  %v2162_v29 = vsub.f32 %v5365_v22, %v2121_v57  ;;  %v2163_v42 = vsub.f32 %v5369_v54, %v2121_v57  ;;  %2249 = vadd.xlane.f32.xlu0 %v2248_v2 }
 0x7df   : > { %v3794_v5 = vpop.eup %3793  ;;  %v2296_v6 = vpack.c.bf16 %v3792_v58, %v3788_v46 }
 0x7e0   : > { %3803 = vpow2.f32 %v2200_v60  ;;  %v2204_v16 = vmul.f32 1.442695, %v2162_v29  ;;  %v2206_v19 = vmul.f32 1.442695, %v2163_v42  ;;  %v2297_v13 = vpack.c.bf16 %v3794_v5, %v3790_v63 }
 0x7e1   : > { %3805 = vpow2.f32 %v2202_v3  ;;  %v2251_v53 = vadd.f32 %v3794_v5, %v3792_v58 }
 0x7e2   : > { %v3796_v1 = vpop.eup %3795  ;;  %3807 = vpow2.f32 %v2204_v16  ;;  %2360 = vmatprep.mubr.bf16.mxu0 %v2297_v13 }
 0x7e3   : > { %v3798_v36 = vpop.eup %3797  ;;  %3809 = vpow2.f32 %v2206_v19  ;;  %2252 = vadd.xlane.f32.xlu1 %v2251_v53  ;;  %2361 = vmatmul.mubr.bf16.vlgmr.msra.gmra.mrb[16].mxu0 %v2296_v6  ;;  %v2124_v32 = vpop.xlane.xlu0 %2123 }
 0x7e4   : > { %v2164_v22 = vsub.f32 %v5373_v37, %v2124_v32  ;;  %v2165_v54 = vsub.f32 %v5375_v38, %v2124_v32  ;;  %v2254_v35 = vadd.f32 %v3798_v36, %v3796_v1 }
 0x7e5   : > { %v2127_v40 = vpop.xlane.xlu1 %2126 }
 0x7e6   : > { %v3800_v41 = vpop.eup %3799  ;;  %v2208_v44 = vmul.f32 1.442695, %v2164_v22  ;;  %v2210_v8 = vmul.f32 1.442695, %v2165_v54  ;;  %v2166_v45 = vsub.f32 %v5377_v48, %v2127_v40  ;;  %v2167_v9 = vsub.f32 %v5381_v50, %v2127_v40  ;;  %2255 = vadd.xlane.f32.xlu0 %v2254_v35 }
 0x7e7   : > { %v3802_v21 = vpop.eup %3801  ;;  %v2298_v47 = vpack.c.bf16 %v3800_v41, %v3796_v1 }
 0x7e8   : > { %3811 = vpow2.f32 %v2208_v44  ;;  %v2212_v0 = vmul.f32 1.442695, %v2166_v45  ;;  %v2214_v43 = vmul.f32 1.442695, %v2167_v9  ;;  %v2299_v28 = vpack.c.bf16 %v3802_v21, %v3798_v36 }
 0x7e9   : > { %3813 = vpow2.f32 %v2210_v8  ;;  %v2257_v37 = vadd.f32 %v3802_v21, %v3800_v41 }
 0x7ea   : > { %v3804_v49 = vpop.eup %3803  ;;  %3815 = vpow2.f32 %v2212_v0  ;;  %2368 = vmatprep.mubr.bf16.mxu0 %v2299_v28 }
 0x7eb   : > { %v3806_v38 = vpop.eup %3805  ;;  %3817 = vpow2.f32 %v2214_v43  ;;  %2258 = vadd.xlane.f32.xlu1 %v2257_v37  ;;  %2369 = vmatmul.mubr.bf16.gmra.mrb[20].mxu0 %v2298_v47  ;;  %v2130_v23 = vpop.xlane.xlu0 %2129 }
 0x7ec   : > { %v3808_v48 = vpop.eup %3807  ;;  %v2168_v50 = vsub.f32 %v5385_v55, %v2130_v23  ;;  %v2169_v17 = vsub.f32 %v5387_v56, %v2130_v23  ;;  %v2260_v20 = vadd.f32 %v3806_v38, %v3804_v49 }
 0x7ed   : > { %v3810_v51 = vpop.eup %3809  ;;  %v2133_v14 = vpop.xlane.xlu1 %2132  ;;  %v2300_v33 = vpack.c.bf16 %v3808_v48, %v3804_v49 }
 0x7ee   : > { %v2216_v46 = vmul.f32 1.442695, %v2168_v50  ;;  %v2218_v52 = vmul.f32 1.442695, %v2169_v17  ;;  %v2170_v62 = vsub.f32 %v5389_v59, %v2133_v14  ;;  %v2171_v63 = vsub.f32 %v5393_v61, %v2133_v14  ;;  %2261 = vadd.xlane.f32.xlu0 %v2260_v20 }
 0x7ef   : > { %v2301_v24 = vpack.c.bf16 %v3810_v51, %v3806_v38  ;;  %v2263_v4 = vadd.f32 %v3810_v51, %v3808_v48 }
 0x7f0   : > { %3819 = vpow2.f32 %v2216_v46  ;;  %v2220_v15 = vmul.f32 1.442695, %v2170_v62  ;;  %v2222_v2 = vmul.f32 1.442695, %v2171_v63 }
 0x7f1   : > { %3821 = vpow2.f32 %v2218_v52  ;;  %2376 = vmatprep.mubr.bf16.mxu0 %v2301_v24  ;;  %2264 = vadd.xlane.f32.xlu1 %v2263_v4 }
 0x7f2   : > { %v3812_v55 = vpop.eup %3811  ;;  %3823 = vpow2.f32 %v2220_v15 }
 0x7f3   : > { %v3814_v56 = vpop.eup %3813  ;;  %3825 = vpow2.f32 %v2222_v2  ;;  %2377 = vmatmul.mubr.bf16.gmra.mrb[24].mxu0 %v2300_v33  ;;  %v2136_v57 = vpop.xlane.xlu0 %2135 }
 0x7f4   : > { %v3816_v58 = vpop.eup %3815  ;;  %v2172_v59 = vsub.f32 %v5397_v7, %v2136_v57  ;;  %v2173_v61 = vsub.f32 %v5399_v11, %v2136_v57  ;;  %v2266_v60 = vadd.f32 %v3814_v56, %v3812_v55 }
 0x7f5   : > { %v3818_v3 = vpop.eup %3817  ;;  %v2139_v29 = vpop.xlane.xlu1 %2138  ;;  %v2302_v42 = vpack.c.bf16 %v3816_v58, %v3812_v55 }
 0x7f6   : > { %v2224_v5 = vmul.f32 1.442695, %v2172_v59  ;;  %v2226_v6 = vmul.f32 1.442695, %v2173_v61  ;;  %v2174_v16 = vsub.f32 %v5401_v10, %v2139_v29  ;;  %v2175_v19 = vsub.f32 %v5405_v18, %v2139_v29  ;;  %2267 = vadd.xlane.f32.xlu0 %v2266_v60  ;;  %v3779_v60 = vld [vmem:[#allocation23] sm:$0xff]   ;;  %v3781_v29 = vld [vmem:[#allocation23 + $0x10] sm:$0xff]  }
 0x7f7   : > { %v2303_v13 = vpack.c.bf16 %v3818_v3, %v3814_v56  ;;  %v2269_v53 = vadd.f32 %v3818_v3, %v3816_v58  ;;  %v3780_v3 = vld [vmem:[#allocation23 + $0x8] sm:$0xff]   ;;  %3394 = vmatprep.subr.bf16.mxu0 %v3779_v60 }
 0x7f8   : > { %3827 = vpow2.f32 %v2224_v5  ;;  %v2228_v1 = vmul.f32 1.442695, %v2174_v16  ;;  %v2230_v36 = vmul.f32 1.442695, %v2175_v19  ;;  %3395 = vmatpush3.bf16.msra.mxu0 %v3779_v60  ;;  %v3783_v5 = vld [vmem:[#allocation23 + $0x20] sm:$0xff]   ;;  %v3785_v16 = vld [vmem:[#allocation23 + $0x30] sm:$0xff]  }
 0x7f9   : > { %3829 = vpow2.f32 %v2226_v6  ;;  %2384 = vmatprep.mubr.bf16.mxu0 %v2303_v13  ;;  %2270 = vadd.xlane.f32.xlu1 %v2269_v53  ;;  %v3784_v6 = vld [vmem:[#allocation23 + $0x28] sm:$0xff]   ;;  %v3786_v19 = vld [vmem:[#allocation23 + $0x38] sm:$0xff]  }
 0x7fa   : > { %v3820_v7 = vpop.eup %3819  ;;  %3831 = vpow2.f32 %v2228_v1  ;;  %3396 = vmatprep.subr.bf16.mxu0 %v3780_v3 }
 0x7fb   : > { %v3822_v11 = vpop.eup %3821  ;;  %3833 = vpow2.f32 %v2230_v36  ;;  %2385 = vmatmul.mubr.bf16.gmra.mrb[28].mxu0 %v2302_v42  ;;  %v2142_v32 = vpop.xlane.xlu0 %2141  ;;  %v3782_v42 = vld [vmem:[#allocation23 + $0x18] sm:$0xff]  }
 0x7fc   : > { %v3824_v22 = vpop.eup %3823  ;;  %v2176_v10 = vsub.f32 %v5409_v25, %v2142_v32  ;;  %v2177_v18 = vsub.f32 %v5411_v12, %v2142_v32  ;;  %v2272_v54 = vadd.f32 %v3822_v11, %v3820_v7  ;;  %3397 = vmatpush3.bf16.msra.mxu0 %v3780_v3 }
 0x7fd   : > { %v3826_v35 = vpop.eup %3825  ;;  %v2145_v40 = vpop.xlane.xlu1 %2144  ;;  %v2304_v41 = vpack.c.bf16 %v3824_v22, %v3820_v7  ;;  %3398 = vmatprep.subr.bf16.mxu0 %v3781_v29 }
 0x7fe   : > { %v2232_v44 = vmul.f32 1.442695, %v2176_v10  ;;  %v2234_v8 = vmul.f32 1.442695, %v2177_v18  ;;  %v2178_v45 = vsub.f32 %v5413_v26, %v2145_v40  ;;  %v2179_v9 = vsub.f32 %v5417_v27, %v2145_v40  ;;  %2273 = vadd.xlane.f32.xlu0 %v2272_v54 }
 0x7ff   : > { %v2305_v21 = vpack.c.bf16 %v3826_v35, %v3822_v11  ;;  %v2275_v47 = vadd.f32 %v3826_v35, %v3824_v22 }
 0x800   : > { %3835 = vpow2.f32 %v2232_v44  ;;  %v2236_v0 = vmul.f32 1.442695, %v2178_v45  ;;  %v2238_v43 = vmul.f32 1.442695, %v2179_v9  ;;  %3399 = vmatpush3.bf16.msra.mxu0 %v3781_v29 }
 0x801   : > { %3837 = vpow2.f32 %v2234_v8  ;;  %2392 = vmatprep.mubr.bf16.mxu0 %v2305_v21  ;;  %2276 = vadd.xlane.f32.xlu1 %v2275_v47 }
 0x802   : > { %v3828_v25 = vpop.eup %3827  ;;  %3839 = vpow2.f32 %v2236_v0  ;;  %3400 = vmatprep.subr.bf16.mxu0 %v3782_v42 }
 0x803   : > { %v3830_v12 = vpop.eup %3829  ;;  %3841 = vpow2.f32 %v2238_v43  ;;  %2393 = vmatmul.mubr.bf16.gmra.mrb[32].mxu0 %v2304_v41  ;;  %v2148_v28 = vpop.xlane.xlu0 %2147 }
 0x804   : > { %v3832_v37 = vpop.eup %3831  ;;  %v2180_v26 = vsub.f32 %v5421_v30, %v2148_v28  ;;  %v2181_v27 = vsub.f32 %v5423_v39, %v2148_v28  ;;  %v2278_v49 = vadd.f32 %v3830_v12, %v3828_v25  ;;  %3401 = vmatpush3.bf16.msra.mxu0 %v3782_v42 }
 0x805   : > { %v3834_v38 = vpop.eup %3833  ;;  %v2151_v23 = vpop.xlane.xlu1 %2150  ;;  %v2306_v48 = vpack.c.bf16 %v3832_v37, %v3828_v25  ;;  %3402 = vmatprep.subr.bf16.mxu0 %v3783_v5 }
 0x806   : > { %v2240_v50 = vmul.f32 1.442695, %v2180_v26  ;;  %v2242_v17 = vmul.f32 1.442695, %v2181_v27  ;;  %2279 = vadd.xlane.f32.xlu0 %v2278_v49  ;;  %v2182_v20 = vsub.f32 %v5425_v31, %v2151_v23  ;;  %v2183_v51 = vsub.f32 %v5429_v34, %v2151_v23 }
 0x807   : > { %v2307_v14 = vpack.c.bf16 %v3834_v38, %v3830_v12  ;;  %v2281_v33 = vadd.f32 %v3834_v38, %v3832_v37 }
 0x808   : > { %3843 = vpow2.f32 %v2240_v50  ;;  %v2244_v46 = vmul.f32 1.442695, %v2182_v20  ;;  %v2246_v52 = vmul.f32 1.442695, %v2183_v51  ;;  %3403 = vmatpush3.bf16.msra.mxu0 %v3783_v5 }
 0x809   : > { %3845 = vpow2.f32 %v2242_v17  ;;  %2400 = vmatprep.mubr.bf16.mxu0 %v2307_v14  ;;  %2282 = vadd.xlane.f32.xlu1 %v2281_v33 }
 0x80a   : > { %v3836_v30 = vpop.eup %3835  ;;  %3847 = vpow2.f32 %v2244_v46  ;;  %3404 = vmatprep.subr.bf16.mxu0 %v3784_v6 }
 0x80b   : > { %v3838_v39 = vpop.eup %3837  ;;  %3849 = vpow2.f32 %v2246_v52  ;;  %2401 = vmatmul.mubr.bf16.gmra.mrb[36].mxu0 %v2306_v48 }
 0x80c   : > { %v3840_v62 = vpop.eup %3839  ;;  %v2284_v63 = vadd.f32 %v3838_v39, %v3836_v30  ;;  %3405 = vmatpush3.bf16.msra.mxu0 %v3784_v6 }
 0x80d   : > { %v3842_v24 = vpop.eup %3841  ;;  %v2308_v4 = vpack.c.bf16 %v3840_v62, %v3836_v30  ;;  %3406 = vmatprep.subr.bf16.mxu0 %v3785_v16 }
 0x80e   : > { %2285 = vadd.xlane.f32.xlu0 %v2284_v63  ;;  %v2309_v31 = vpack.c.bf16 %v3842_v24, %v3838_v39  ;;  %v2287_v34 = vadd.f32 %v3842_v24, %v3840_v62 }
 0x810   : > { %2408 = vmatprep.mubr.bf16.mxu1 %v2309_v31  ;;  %2288 = vadd.xlane.f32.xlu1 %v2287_v34 }
 0x811   : > { %2409 = vmatmul.mubr.bf16.vlgmr.msra.gmra.mrb[32].mxu1 %v2308_v4  ;;  %3407 = vmatpush3.bf16.msra.mxu0 %v3785_v16 }
 0x812   : > { %v3844_v15 = vpop.eup %3843  ;;  %3408 = vmatprep.subr.bf16.mxu0 %v3786_v19 }
 0x813   : > { %v3846_v2 = vpop.eup %3845 }
 0x814   : > { %v3848_v55 = vpop.eup %3847  ;;  %v2290_v56 = vadd.f32 %v3846_v2, %v3844_v15 }
 0x815   : > { %v3850_v57 = vpop.eup %3849  ;;  %v2310_v58 = vpack.c.bf16 %v3848_v55, %v3844_v15  ;;  %3409 = vmatpush3.bf16.msra.mxu0 %v3786_v19 }
 0x816   : > { %2291 = vadd.xlane.f32.xlu0 %v2290_v56  ;;  %v2311_v59 = vpack.c.bf16 %v3850_v57, %v3846_v2  ;;  %v2293_v61 = vadd.f32 %v3850_v57, %v3848_v55 }
 0x818   : > { %2416 = vmatprep.mubr.bf16.mxu1 %v2311_v59  ;;  %2294 = vadd.xlane.f32.xlu1 %v2293_v61 }
 0x819   : > { %2417 = vmatmul.mubr.bf16.gmra.mrb[36].mxu1 %v2310_v58 }
 0x86b   : > { %v2250_v13 = vpop.xlane.xlu0 %2249 }
 0x86c   : > { %3851 = vrcp.f32 %v2250_v13 }
 0x870   : > { %v2253_v53 = vpop.xlane.xlu1 %2252 }
 0x871   : > { %3853 = vrcp.f32 %v2253_v53 }
 0x873   : > { %v2256_v1 = vpop.xlane.xlu0 %2255 }
 0x874   : > { %3855 = vrcp.f32 %v2256_v1 }
 0x876   : > { %v3852_v18 = vpop.eup %3851 }
 0x878   : > { %v2259_v36 = vpop.xlane.xlu1 %2258 }
 0x879   : > { %3857 = vrcp.f32 %v2259_v36 }
 0x87b   : > { %v3854_v35 = vpop.eup %3853  ;;  %v2262_v44 = vpop.xlane.xlu0 %2261 }
 0x87c   : > { %3859 = vrcp.f32 %v2262_v44 }
 0x87e   : > { %v2265_v8 = vpop.xlane.xlu1 %2264  ;;  %v3856_v25 = vpop.eup %3855 }
 0x87f   : > { %3861 = vrcp.f32 %v2265_v8 }
 0x883   : > { %v3858_v28 = vpop.eup %3857  ;;  %v2268_v27 = vpop.xlane.xlu0 %2267 }
 0x884   : > { %3863 = vrcp.f32 %v2268_v27 }
 0x886   : > { %v2271_v49 = vpop.xlane.xlu1 %2270  ;;  %v3860_v51 = vpop.eup %3859 }
 0x887   : > { %3865 = vrcp.f32 %v2271_v49 }
 0x889   : > { %v3862_v33 = vpop.eup %3861 }
 0x88b   : > { %v2274_v30 = vpop.xlane.xlu0 %2273 }
 0x88c   : > { %3867 = vrcp.f32 %v2274_v30  ;;  %v5465_v30 = vld [vmem:[#allocation24] ss:$0 sm:$0xff] }
 0x88e   : > { %v2277_v39 = vpop.xlane.xlu1 %2276  ;;  %v3864_v15 = vpop.eup %3863 }
 0x88f   : > { %3869 = vrcp.f32 %v2277_v39 }
 0x891   : > { %v3866_v55 = vpop.eup %3865 }
 0x893   : > { %v2280_v58 = vpop.xlane.xlu0 %2279 }
 0x894   : > { %3871 = vrcp.f32 %v2280_v58  ;;  %v3885_v58 = vld [vmem:[%s5283_s21 + $0x18] sm:$0xff] }
 0x896   : > { %v2283_v59 = vpop.xlane.xlu1 %2282  ;;  %v3868_v6 = vpop.eup %3867 }
 0x897   : > { %3873 = vrcp.f32 %v2283_v59 }
 0x899   : > { %v3870_v19 = vpop.eup %3869 }
 0x89b   : > { %v2286_v13 = vpop.xlane.xlu0 %2285 }
 0x89c   : > { %3875 = vrcp.f32 %v2286_v13 }
 0x89d   : > { %v2289_v53 = vpop.xlane.xlu1 %2288 }
 0x89e   : > { %3877 = vrcp.f32 %v2289_v53 }
 0x8a5   : > { %v2295_v44 = vpop.xlane.xlu1 %2294 }
 0x8b6   : > { %v3158_v7 = vpop.f32.mrb[16].mxu0 }
 0x8b7   : > { %v3159_v11 = vpop.f32.mrb[17].mxu0 }
 0x8b8   : > { %v3160_v32 = vadd.f32 %v3159_v11, %v3158_v7  ;;  %v3161_v22 = vpop.f32.mrb[18].mxu0 }
 0x8b9   : > { %v3162_v10 = vpop.f32.mrb[19].mxu0 }
 0x8ba   : > { %v3163_v54 = vadd.f32 %v3162_v10, %v3161_v22  ;;  %v2441_v40 = vmul.f32 %v3852_v18, %v3160_v32 }
 0x8bc   : > { %v2442_v41 = vmul.f32 %v3854_v35, %v3163_v54  ;;  %v3872_v54 = vpop.eup %3871 }
 0x8be   : > { %v3164_v45 = vpop.f32.mrb[20].mxu0  ;;  %v2457_v9 = vpack.c.bf16 %v2442_v41, %v2441_v40  ;;  %v3874_v40 = vpop.eup %3873 }
 0x8bf   : > { %v3165_v21 = vpop.f32.mrb[21].mxu0  ;;  %v2292_v41 = vpop.xlane.xlu0 %2291 }
 0x8c0   : > { %v3166_v47 = vadd.f32 %v3165_v21, %v3164_v45  ;;  %v3167_v0 = vpop.f32.mrb[22].mxu0  ;;  %3410 = vmatprep.mubr.bf16.mxu0 %v2457_v9  ;;  %3879 = vrcp.f32 %v2292_v41 }
 0x8c1   : > { %v3168_v43 = vpop.f32.mrb[23].mxu0  ;;  %3881 = vrcp.f32 %v2295_v44  ;;  %v3891_v44 = vld [vmem:[%s5283_s21 + $0x50] sm:$0xff] }
 0x8c2   : > { %v3169_v12 = vadd.f32 %v3168_v43, %v3167_v0  ;;  %v2443_v37 = vmul.f32 %v3856_v25, %v3166_v47 }
 0x8c4   : > { %v2444_v26 = vmul.f32 %v3858_v28, %v3169_v12  ;;  %v3876_v12 = vpop.eup %3875 }
 0x8c6   : > { %v2458_v38 = vpack.c.bf16 %v2444_v26, %v2443_v37  ;;  %v3170_v23 = vpop.f32.mrb[24].mxu0  ;;  %v3878_v37 = vpop.eup %3877 }
 0x8c7   : > { %v3171_v48 = vpop.f32.mrb[25].mxu0 }
 0x8c8   : > { %v3172_v50 = vadd.f32 %v3171_v48, %v3170_v23  ;;  %v3173_v17 = vpop.f32.mrb[26].mxu0  ;;  %3411 = vmatmul.mubr.bf16.vlgmr.msra.gmra.mrb[40].mxu0 %v2458_v38 }
 0x8c9   : > { %v3174_v20 = vpop.f32.mrb[27].mxu0 }
 0x8ca   : > { %v3175_v14 = vadd.f32 %v3174_v20, %v3173_v17  ;;  %v2445_v46 = vmul.f32 %v3860_v51, %v3172_v50  ;;  %v3880_v20 = vpop.eup %3879 }
 0x8cc   : > { %v2446_v52 = vmul.f32 %v3862_v33, %v3175_v14  ;;  %v3882_v14 = vpop.eup %3881 }
 0x8ce   : > { %v3176_v62 = vpop.f32.mrb[28].mxu0  ;;  %v2459_v63 = vpack.c.bf16 %v2446_v52, %v2445_v46 }
 0x8cf   : > { %v3177_v24 = vpop.f32.mrb[29].mxu0 }
 0x8d0   : > { %v3178_v4 = vadd.f32 %v3177_v24, %v3176_v62  ;;  %v3179_v31 = vpop.f32.mrb[30].mxu0  ;;  %3414 = vmatprep.mubr.bf16.mxu0 %v2459_v63 }
 0x8d1   : > { %v3180_v34 = vpop.f32.mrb[31].mxu0 }
 0x8d2   : > { %v3181_v2 = vadd.f32 %v3180_v34, %v3179_v31  ;;  %v2447_v56 = vmul.f32 %v3864_v15, %v3178_v4  ;;  %v3883_v31 = vld [vmem:[%s5283_s21 + $0x10] sm:$0xff] }
 0x8d4   : > { %v2448_v57 = vmul.f32 %v3866_v55, %v3181_v2  ;;  %v3884_v55 = vld [vmem:[%s5283_s21] sm:$0xff] }
 0x8d6   : > { %v3182_v61 = vpop.f32.mrb[32].mxu0  ;;  %v2460_v60 = vpack.c.bf16 %v2448_v57, %v2447_v56 }
 0x8d7   : > { %v3183_v3 = vpop.f32.mrb[33].mxu0 }
 0x8d8   : > { %v3184_v29 = vadd.f32 %v3183_v3, %v3182_v61  ;;  %v3185_v42 = vpop.f32.mrb[34].mxu0  ;;  %3415 = vmatmul.mubr.bf16.gmra.mrb[44].mxu0 %v2460_v60  ;;  %v3886_v61 = vld [vmem:[%s5283_s21 + $0x8] sm:$0xff] }
 0x8d9   : > { %v3186_v5 = vpop.f32.mrb[35].mxu0 }
 0x8da   : > { %v3187_v16 = vadd.f32 %v3186_v5, %v3185_v42  ;;  %v2449_v1 = vmul.f32 %v3868_v6, %v3184_v29 }
 0x8dc   : > { %v2450_v36 = vmul.f32 %v3870_v19, %v3187_v16  ;;  %v3887_v16 = vld [vmem:[%s5283_s21 + $0x30] sm:$0xff] }
 0x8de   : > { %v3188_v7 = vpop.f32.mrb[36].mxu0  ;;  %v2461_v11 = vpack.c.bf16 %v2450_v36, %v2449_v1  ;;  %v3888_v1 = vld [vmem:[%s5283_s21 + $0x20] sm:$0xff] }
 0x8df   : > { %v3189_v32 = vpop.f32.mrb[37].mxu0 }
 0x8e0   : > { %v3190_v22 = vadd.f32 %v3189_v32, %v3188_v7  ;;  %v3191_v10 = vpop.f32.mrb[38].mxu0  ;;  %3418 = vmatprep.mubr.bf16.mxu0 %v2461_v11  ;;  %v3889_v11 = vld [vmem:[%s5283_s21 + $0x38] sm:$0xff] }
 0x8e1   : > { %v3192_v18 = vpop.f32.mrb[39].mxu0 }
 0x8e2   : > { %v3193_v35 = vadd.f32 %v3192_v18, %v3191_v10  ;;  %v2451_v8 = vmul.f32 %v3872_v54, %v3190_v22  ;;  %v3890_v22 = vld [vmem:[%s5283_s21 + $0x28] sm:$0xff] }
 0x8e4   : > { %v2452_v45 = vmul.f32 %v3874_v40, %v3193_v35  ;;  %v3194_v9 = vpop.f32.mrb[32].mxu1 }
 0x8e5   : > { %v3195_v21 = vpop.f32.mrb[33].mxu1 }
 0x8e6   : > { %v3196_v47 = vadd.f32 %v3195_v21, %v3194_v9  ;;  %v3197_v0 = vpop.f32.mrb[34].mxu1  ;;  %v2462_v43 = vpack.c.bf16 %v2452_v45, %v2451_v8  ;;  %v3892_v21 = vld [vmem:[%s5283_s21 + $0x40] sm:$0xff] }
 0x8e7   : > { %v3198_v25 = vpop.f32.mrb[35].mxu1 }
 0x8e8   : > { %v3199_v28 = vadd.f32 %v3198_v25, %v3197_v0  ;;  %3419 = vmatmul.mubr.bf16.gmra.mrb[48].mxu0 %v2462_v43  ;;  %v2453_v26 = vmul.f32 %v3876_v12, %v3196_v47  ;;  %v3893_v43 = vld [vmem:[%s5283_s21 + $0x58] sm:$0xff]  ;;  %v3894_v12 = vld [vmem:[%s5283_s21 + $0x48] sm:$0xff] }
 0x8ea   : > { %v2454_v27 = vmul.f32 %v3878_v37, %v3199_v28 }
 0x8ec   : > { %v3200_v49 = vpop.f32.mrb[36].mxu1  ;;  %v2463_v38 = vpack.c.bf16 %v2454_v27, %v2453_v26 }
 0x8ed   : > { %v3201_v23 = vpop.f32.mrb[37].mxu1 }
 0x8ee   : > { %v3202_v48 = vadd.f32 %v3201_v23, %v3200_v49  ;;  %v3203_v50 = vpop.f32.mrb[38].mxu1  ;;  %3422 = vmatprep.mubr.bf16.mxu0 %v2463_v38  ;;  %v3895_v23 = vld [vmem:[%s5283_s21 + $0x70] sm:$0xff] }
 0x8ef   : > { %v3204_v17 = vpop.f32.mrb[39].mxu1 }
 0x8f0   : > { %v3205_v51 = vadd.f32 %v3204_v17, %v3203_v50  ;;  %v2455_v33 = vmul.f32 %v3880_v20, %v3202_v48  ;;  %v3896_v20 = vld [vmem:[%s5283_s21 + $0x60] sm:$0xff] }
 0x8f2   : > { %v2456_v46 = vmul.f32 %v3882_v14, %v3205_v51 }
 0x8f4   : > { %v2464_v52 = vpack.c.bf16 %v2456_v46, %v2455_v33  ;;  %v3897_v33 = vld [vmem:[%s5283_s21 + $0x78] sm:$0xff] }
 0x8f6   : > { %3423 = vmatmul.mubr.bf16.gmra.mrb[52].mxu0 %v2464_v52  ;;  %v3898_v52 = vld [vmem:[%s5283_s21 + $0x68] sm:$0xff] }
 0x99b   : > { %v3412_v39 = vpop.f32.mrb[40].mxu0 }
 0x99c   : > { %v2579_v62 = vadd.f32 %v3412_v39, %v5465_v30  ;;  %v2570_v63 = vpop.f32.mrb[41].mxu0 }
 0x99d   : > { %v2571_v24 = vadd.f32 %v5465_v30, %v2570_v63  ;;  %v3413_v4 = vpop.f32.mrb[42].mxu0 }
 0x99e   : > { %v2635_v34 = vadd.f32 %v3883_v31, %v2579_v62  ;;  %v2582_v15 = vadd.f32 %v3413_v4, %v5465_v30  ;;  %v2573_v2 = vpop.f32.mrb[43].mxu0 }
 0x99f   : > { %v2633_v56 = vadd.f32 %v3884_v55, %v2571_v24  ;;  %v2574_v57 = vadd.f32 %v5465_v30, %v2573_v2 }
 0x9a0   : > { %2651 = vst [vmem:[%s4910_s24 + $0x10] sm:$0xff] %v2635_v34  ;;  %v2636_v59 = vadd.f32 %v3885_v58, %v2582_v15 }
 0x9a1   : > { %2649 = vst [vmem:[%s4910_s24] sm:$0xff] %v2633_v56  ;;  %v2634_v60 = vadd.f32 %v3886_v61, %v2574_v57 }
 0x9a2   : > { %2652 = vst [vmem:[%s4910_s24 + $0x18] sm:$0xff] %v2636_v59 }
 0x9a3   : > { %2650 = vst [vmem:[%s4910_s24 + $0x8] sm:$0xff] %v2634_v60 }
 0x9ab   : > { %v3416_v3 = vpop.f32.mrb[44].mxu0 }
 0x9ac   : > { %v2595_v29 = vadd.f32 %v3416_v3, %v5465_v30  ;;  %v2586_v42 = vpop.f32.mrb[45].mxu0 }
 0x9ad   : > { %v2587_v5 = vadd.f32 %v5465_v30, %v2586_v42  ;;  %v3417_v6 = vpop.f32.mrb[46].mxu0 }
 0x9ae   : > { %v2639_v19 = vadd.f32 %v3887_v16, %v2595_v29  ;;  %v2598_v13 = vadd.f32 %v3417_v6, %v5465_v30  ;;  %v2589_v53 = vpop.f32.mrb[47].mxu0 }
 0x9af   : > { %v2637_v36 = vadd.f32 %v3888_v1, %v2587_v5  ;;  %v2590_v7 = vadd.f32 %v5465_v30, %v2589_v53 }
 0x9b0   : > { %2655 = vst [vmem:[%s4910_s24 + $0x30] sm:$0xff] %v2639_v19  ;;  %v2640_v32 = vadd.f32 %v3889_v11, %v2598_v13 }
 0x9b1   : > { %2653 = vst [vmem:[%s4910_s24 + $0x20] sm:$0xff] %v2637_v36  ;;  %v2638_v10 = vadd.f32 %v3890_v22, %v2590_v7 }
 0x9b2   : > { %2656 = vst [vmem:[%s4910_s24 + $0x38] sm:$0xff] %v2640_v32 }
 0x9b3   : > { %2654 = vst [vmem:[%s4910_s24 + $0x28] sm:$0xff] %v2638_v10 }
 0x9bb   : > { %v3420_v18 = vpop.f32.mrb[48].mxu0 }
 0x9bc   : > { %v2611_v54 = vadd.f32 %v3420_v18, %v5465_v30  ;;  %v2602_v35 = vpop.f32.mrb[49].mxu0 }
 0x9bd   : > { %v2603_v40 = vadd.f32 %v5465_v30, %v2602_v35  ;;  %v3421_v41 = vpop.f32.mrb[50].mxu0 }
 0x9be   : > { %v2643_v8 = vadd.f32 %v3891_v44, %v2611_v54  ;;  %v2614_v45 = vadd.f32 %v3421_v41, %v5465_v30  ;;  %v2605_v9 = vpop.f32.mrb[51].mxu0 }
 0x9bf   : > { %v2641_v47 = vadd.f32 %v3892_v21, %v2603_v40  ;;  %v2606_v0 = vadd.f32 %v5465_v30, %v2605_v9 }
 0x9c0   : > { %2659 = vst [vmem:[%s4910_s24 + $0x50] sm:$0xff] %v2643_v8  ;;  %v2644_v25 = vadd.f32 %v3893_v43, %v2614_v45 }
 0x9c1   : > { %2657 = vst [vmem:[%s4910_s24 + $0x40] sm:$0xff] %v2641_v47  ;;  %v2642_v28 = vadd.f32 %v3894_v12, %v2606_v0 }
 0x9c2   : > { %2660 = vst [vmem:[%s4910_s24 + $0x58] sm:$0xff] %v2644_v25 }
 0x9c3   : > { %2658 = vst [vmem:[%s4910_s24 + $0x48] sm:$0xff] %v2642_v28 }
 0x9c9   : > { %v3424_v37 = vpop.f32.mrb[52].mxu0 }
 0x9ca   : > { %v2627_v26 = vadd.f32 %v3424_v37, %v5465_v30  ;;  %v2618_v27 = vpop.f32.mrb[53].mxu0 }
 0x9cb   : > { %v2619_v49 = vadd.f32 %v5465_v30, %v2618_v27  ;;  %v3425_v38 = vpop.f32.mrb[54].mxu0 }
 0x9cc   : > { %v2647_v48 = vadd.f32 %v3895_v23, %v2627_v26  ;;  %v2630_v50 = vadd.f32 %v3425_v38, %v5465_v30  ;;  %v2621_v17 = vpop.f32.mrb[55].mxu0 }
 0x9cd   : > { %v2645_v51 = vadd.f32 %v3896_v20, %v2619_v49  ;;  %v2622_v14 = vadd.f32 %v5465_v30, %v2621_v17 }
 0x9ce   : > { %2663 = vst [vmem:[%s4910_s24 + $0x70] sm:$0xff] %v2647_v48  ;;  %v2648_v46 = vadd.f32 %v3897_v33, %v2630_v50 }
 0x9cf   : > { %2661 = vst [vmem:[%s4910_s24 + $0x60] sm:$0xff] %v2645_v51  ;;  %v2646_v39 = vadd.f32 %v3898_v52, %v2622_v14 }
 0x9d0   : > { %2664 = vst [vmem:[%s4910_s24 + $0x78] sm:$0xff] %v2648_v46 }
 0x9d1   : > { %2662 = vst [vmem:[%s4910_s24 + $0x68] sm:$0xff] %v2646_v39 }
 0x9d2   : > { %4250 = shalt.err (!%p4247_p11)
}
 0x9d3   : > { %s4251_s28 = scalar_lea.hbm %s5517_s6, 2048  ;;  %s4255_s15 = scalar_lea.hbm %s5665_s4, 8192 }
 0x9d4   : > { %p4252_p9 = scmp.ne.s32.totalorder %s5517_s6, %s4251_s28  ;;  %p4256_p3 = scmp.lt.u32.totalorder %s5517_s6, %s5665_s4 }
 0x9d5   : > { %p4257_p4 = scmp.lt.u32.totalorder %s4255_s15, %s4251_s28  ;;  %p4259_p8 = scmp.lt.u32.totalorder %s4251_s28, %s5517_s6 }
 0x9d6   : > { %p4253_p13 = pnand %p4252_p9, %p5666_p5 }
 0x9d7   : > { %p4258_p10 = por %p4257_p4, %p4256_p3 }
 0x9d8   : > { %p4254_p0 = pneg %p4253_p13 }
 0x9d9   : > { %p4260_p12 = por %p4259_p8, %p4258_p10 }
 0x9db   : > { %p4261_p2 = pnand %p4260_p12, %p4254_p0 }
 0x9dd   : > { %4264 = shalt.err (!%p4261_p2)
}
 0x9de   : > { %s4406_s2 = smov 128   ;;  %s4407_s12 = smov 8  }
 0x9df   : > { %3576 = dma.vmem_to_hbm [thread:$0]  (%p5666_p5), %s5519_s16, 2048, %s5517_s6, %s5527_s5, %s4406_s2, %s4406_s2, %s4407_s12  }
 0x9e0 PF: > { %s5667_s1 = sld [smem:[#allocation35_spill]]  ;;  %p3643_p7 = scmp.ge.s32.totalorder %s4383_s13, 2 }
 0x9e1   : > { %p5668_p6 = scmp.ne.s32.totalorder %s5651_s19, 0 }
 0x9e3   : > { %p3617_p1 = pnand %p3643_p7, %p5668_p6 }
 0x9e6   : > { %s2696_s27 = sand.u32 1, %s5667_s1  }
 0x9e7   : > { %s2697_s28 = scalar_lea.sflag [#allocation8], %s2696_s27 }
 0x9e8   : > { %4338 = dma.done.wait (!%p3617_p1), %s2697_s28, 2048  }
 0x9e9   : > { %4340 = vsyncadd (!%p3617_p1), %s2697_s28, 4294965248  ;;  %s34_s13 = sadd.s32 1, %s4383_s13   ;;  %s5669_s21 = sld [smem:[#allocation36_spill]] }
 0x9ea   : > { %p31_p11 = scmp.ge.s32.totalorder %s34_s13, 6   ;;  %s5670_s24 = sld [smem:[#allocation37_spill]] }
 0x9eb   : > { %s5671_s15 = smov %s5689_s22  ;;  %s5672_s17 = smov %s4818_s23 }
 0x9ec   : > { %s5674_s23 = smov %s5671_s15  ;;  %s5678_s27 = smov %s4375_s29 }
 0x9ed   : > { %s5679_s28 = smov %s4379_s30  ;;  %s5680_s29 = smov %s5683_s14 }
 0x9ee   : > { %s5681_s30 = smov %s5687_s0  ;;  %33 = sbr.rel (!%p31_p11) target bundleno = 24 (0x18), region = 162 }
 0x9f0   : > { %s5673_s22 = smov %s5670_s24  ;;  %s5675_s24 = smov %s4359_s25 }
 0x9f1   : > { %s5676_s25 = smov %s4363_s26  ;;  %s5677_s26 = smov %s5672_s17 }
 0x9f5   :  { %2702 = vsyncpa [#allocation7], 1 }
 0x9f6   :  { %2704 = vsyncpa [#allocation7 + $0x1], 1 }
 0x9f7   :  { %2705 = vsyncpa [#allocation10], 1 }
 0x9f8   :  { %2706 = vsyncpa [#allocation13], 1 }
 0x9f9   :  { %2707 = vsyncpa [#allocation16], 1 }
 0x9fa   :  { %2708 = vsyncpa [#allocation19], 1 }
 0x9fb   :  { %2709 = vsyncpa [#allocation22], 1 }
 0x9fc   :  { %2710 = vsyncpa [#allocation25], 1 }
 0x9fd   :  { %2711 = vsyncpa [#allocation8], 1 }
 0x9fe   :  { %2713 = vsyncpa [#allocation8 + $0x1], 1 }

</bundles_post_ra>
